<compile_context>
chip_gen: v7x
topology: tpu7x:2x2x1
jax: 0.10.0
libtpu: 0.0.40
codegen_flags: <defaults>
</compile_context>

<pallas_src>
import functools

import jax
import jax.numpy as jnp
from jax.experimental import pallas as pl
from jax.experimental.pallas import tpu as pltpu

BN_EPS = 1e-5          # PyTorch BatchNorm default
NORM_EPS = 1e-12       # F.normalize default
LRELU_SLOPE = 0.1      # nn.LeakyReLU(0.1)


# --------------------------------------------------------------------------------------
# Helpers
# --------------------------------------------------------------------------------------

def _round_up(x, m):
    return ((x + m - 1) // m) * m


def _pick_tile(dim, candidates=(512, 256, 128)):
    """Largest lane-friendly tile that evenly divides `dim`, else the full dim (always legal)."""
    for t in candidates:
        if dim % t == 0:
            return t
    return dim


def _vmem_limit_bytes():
    """Generation-aware scoped VMEM cap: ~half of physical, clamped to [32 MiB, 64 MiB].
    v7x (64 MiB physical) -> 32 MiB; v5e/v6e (128 MiB physical) -> 64 MiB."""
    cap = 64 * 1024 * 1024
    try:
        cap = int(pltpu.get_tpu_info().vmem_capacity_bytes)
    except Exception:
        pass
    return int(min(64 * 1024 * 1024, max(32 * 1024 * 1024, cap // 2)))


# --------------------------------------------------------------------------------------
# Kernels
# --------------------------------------------------------------------------------------

def _avgpool_kernel(x_ref, out_ref, *, inv_hw):
    # x_ref: (tn, tc, HW) in the feature's native dtype; accumulate the mean in f32.
    xf = x_ref[...].astype(jnp.float32)
    out_ref[...] = jnp.sum(xf, axis=-1) * inv_hw
    # TODO(synk): on v7x the HW-on-lanes reduce + sublane->lane relayout may become the binding
    # slot; an MXU ones-vector reduction or a (C, N)-transposed pooled layout would remove it.


def _bottleneck_bn_kernel(pooled_ref, wfc_ref, gamma_ref, bn_ref, bnc_ref, acc_ref):
    # Grid: (R tiles [parallel], C tiles [arbitrary reduction, iterates fastest]).
    c = pl.program_id(1)

    @pl.when(c == 0)
    def _():
        acc_ref[...] = jnp.zeros_like(acc_ref)

    # pooled tile (N, tcb) @ w_fc tile (tcb, tr) -> accumulate (N, tr) in f32.
    acc_ref[...] += jnp.dot(pooled_ref[...], wfc_ref[...],
                            preferred_element_type=jnp.float32)

    @pl.when(c == pl.num_programs(1) - 1)
    def _():
        b = acc_ref[...]
        # LeakyReLU(0.1)
        b = jnp.where(b >= 0, b, LRELU_SLOPE * b)
        # BatchNorm, training-mode batch statistics (biased variance), bias frozen at 0.
        # Stats are per-feature -> each R tile is independent (safe under "parallel" R axis).
        mu = jnp.mean(b, axis=0, keepdims=True)
        var = jnp.mean((b - mu) ** 2, axis=0, keepdims=True)
        bn = (b - mu) * jax.lax.rsqrt(var + BN_EPS) * gamma_ref[...]
        bn_ref[...] = bn
        bnc_ref[...] = bn.astype(bnc_ref.dtype)   # one-time cast; reused by every class tile


def _classifier_kernel(bnc_ref, bnf_ref, x2_ref, xinv_ref, wcls_ref, ctr_ref, c2_ref, winv_ref,
                       cls_ref, logit_ref, dist_ref):
    # One class tile per grid step; no cross-step state -> safe to mark "parallel".
    # linear classifier (bias=False), compute_dtype operands, f32 accumulation.
    cls = jnp.dot(bnc_ref[...], wcls_ref[...], preferred_element_type=jnp.float32)  # (N, tk)
    cls_ref[...] = cls

    # cosine logits: F.linear(F.normalize(bn), F.normalize(W)) == diag(1/||bn||) cls diag(1/||W||)
    logit_ref[...] = cls * xinv_ref[...] * winv_ref[...]

    # MetaParam center dist-mat: ||x||^2 + ||c||^2 - 2 x c^T.  Kept fully f32 (cancellation-prone).
    dist_ref[...] = (x2_ref[...] + c2_ref[...]
                     - 2.0 * jnp.dot(bnf_ref[...], ctr_ref[...],
                                     preferred_element_type=jnp.float32))


# --------------------------------------------------------------------------------------
# Wrapper
# --------------------------------------------------------------------------------------

def metalearning_head(features, params, *, compute_dtype=jnp.bfloat16):
    """Training-mode forward of MetalearningHead. features: (N, C, H, W)."""
    f32 = jnp.float32
    N, C, H, W = features.shape
    R = params["w_fc"].shape[0]
    K = params["w_cls"].shape[0]
    HW = H * W

    vmem_limit = _vmem_limit_bytes()

    # ---- 1) global average pool, tiled over (N, C), both axes parallel ----
    x = features.reshape(N, C, HW)                     # contiguous reshape; native dtype, no copy
    tc = _pick_tile(C)
    row_bytes = tc * HW * x.dtype.itemsize
    max_tn = max(1, (vmem_limit // 4) // row_bytes)    # double-buffered input dominates VMEM
    if N <= max_tn:
        tn = N
    else:
        tn = next(t for t in range(max_tn, 0, -1) if N % t == 0)

    pooled = pl.pallas_call(
        functools.partial(_avgpool_kernel, inv_hw=1.0 / HW),
        out_shape=jax.ShapeDtypeStruct((N, C), f32),
        grid=(N // tn, C // tc),
        in_specs=[pl.BlockSpec((tn, tc, HW), lambda n, c: (n, c, 0))],
        out_specs=pl.BlockSpec((tn, tc), lambda n, c: (n, c)),
        compiler_params=pltpu.CompilerParams(
            dimension_semantics=("parallel", "parallel"),
            vmem_limit_bytes=vmem_limit),
    )(x)

    # ---- 2) bottleneck (meta_linear + LeakyReLU) + classifier BatchNorm ----
    tcb = _pick_tile(C)
    if tcb == C and C > 512:
        tcb = 256                                      # pad rather than one giant weight block
    C_pad = _round_up(C, tcb)
    tr = _pick_tile(R)                                 # parallel feature-tile axis (v7x megacore)

    w_fc_t = params["w_fc"].T.astype(f32)              # (C, R): pre-transposed, no in-kernel .T
    gamma = params["gamma"].reshape(1, R).astype(f32)
    pooled_c = pooled
    if C_pad != C:
        pooled_c = jnp.pad(pooled_c, ((0, 0), (0, C_pad - C)))
        w_fc_t = jnp.pad(w_fc_t, ((0, C_pad - C), (0, 0)))
    # bf16 operands halve the weight-DMA stream; accumulation stays f32 in VMEM scratch.
    pooled_c = pooled_c.astype(compute_dtype)
    w_fc_t = w_fc_t.astype(compute_dtype)

    # Training-mode BN needs the whole batch resident per feature tile.
    assert N * tr * 4 * 4 < vmem_limit, "N x reduction tile too large for single-block batch stats"

    bn_feat, bn_c = pl.pallas_call(
        _bottleneck_bn_kernel,
        out_shape=(jax.ShapeDtypeStruct((N, R), f32),
                   jax.ShapeDtypeStruct((N, R), compute_dtype)),
        grid=(R // tr, C_pad // tcb),
        in_specs=[pl.BlockSpec((N, tcb), lambda r, c: (0, c)),
                  pl.BlockSpec((tcb, tr), lambda r, c: (c, r)),
                  pl.BlockSpec((1, tr), lambda r, c: (0, r))],
        out_specs=(pl.BlockSpec((N, tr), lambda r, c: (0, r)),
                   pl.BlockSpec((N, tr), lambda r, c: (0, r))),
        scratch_shapes=[pltpu.VMEM((N, tr), f32)],
        compiler_params=pltpu.CompilerParams(
            dimension_semantics=("parallel", "arbitrary"),
            vmem_limit_bytes=vmem_limit),
    )(pooled_c, w_fc_t, gamma)

    # Full-R row reductions hoisted to the wrapper (tiny; can't live in an R-tiled kernel 2).
    x2 = jnp.sum(bn_feat * bn_feat, axis=1, keepdims=True)                         # (N, 1)
    xinv = jax.lax.rsqrt(jnp.maximum(x2, NORM_EPS * NORM_EPS))                     # (N, 1)

    # ---- 3) classifier / cosine logits / center dist-mat, tiled over classes ----
    tk = min(512, _round_up(K, 128))
    K_pad = _round_up(K, tk)
    pad = K_pad - K

    w_cls_t = params["w_cls"].T.astype(f32)            # (R, K)
    centers_t = params["centers"].T.astype(f32)        # (R, K) -- stays f32 (distmat precision)
    # Parameter-only reductions hoisted out of the kernel (done once per call, not per tile).
    c2 = jnp.sum(centers_t * centers_t, axis=0, keepdims=True)                     # (1, K)
    winv = jax.lax.rsqrt(jnp.maximum(
        jnp.sum(w_cls_t * w_cls_t, axis=0, keepdims=True), NORM_EPS * NORM_EPS))   # (1, K)
    if pad:
        w_cls_t = jnp.pad(w_cls_t, ((0, 0), (0, pad)))
        centers_t = jnp.pad(centers_t, ((0, 0), (0, pad)))
        c2 = jnp.pad(c2, ((0, 0), (0, pad)))
        winv = jnp.pad(winv, ((0, 0), (0, pad)))
    w_cls_t = w_cls_t.astype(compute_dtype)            # bf16 stream for the dominant weight DMA
    # TODO(synk): pl.Buffered(3) on the weight specs and fp8 w_cls on v7x were considered but
    # not applied to keep lowering maximally portable across generations.

    cls_p, logits_p, dist_p = pl.pallas_call(
        _classifier_kernel,
        out_shape=(jax.ShapeDtypeStruct((N, K_pad), f32),
                   jax.ShapeDtypeStruct((N, K_pad), f32),
                   jax.ShapeDtypeStruct((N, K_pad), f32)),
        grid=(K_pad // tk,),
        in_specs=[pl.BlockSpec((N, R), lambda k: (0, 0)),     # bn (compute_dtype, pre-cast once)
                  pl.BlockSpec((N, R), lambda k: (0, 0)),     # bn f32 (dist-mat path)
                  pl.BlockSpec((N, 1), lambda k: (0, 0)),
                  pl.BlockSpec((N, 1), lambda k: (0, 0)),
                  pl.BlockSpec((R, tk), lambda k: (0, k)),
                  pl.BlockSpec((R, tk), lambda k: (0, k)),
                  pl.BlockSpec((1, tk), lambda k: (0, k)),
                  pl.BlockSpec((1, tk), lambda k: (0, k))],
        out_specs=(pl.BlockSpec((N, tk), lambda k: (0, k)),
                   pl.BlockSpec((N, tk), lambda k: (0, k)),
                   pl.BlockSpec((N, tk), lambda k: (0, k))),
        compiler_params=pltpu.CompilerParams(
            dimension_semantics=("parallel",),
            vmem_limit_bytes=vmem_limit),
    )(bn_c, bn_feat, x2, xinv, w_cls_t, centers_t, c2, winv)

    return {
        "pda_features": features,
        "cls_outputs": cls_p[:, :K],
        "pred_class_logits": logits_p[:, :K],
        "pooled_features": pooled,
        "bn_features": bn_feat,
        "center_distmat": dist_p[:, :K],
    }


# --------------------------------------------------------------------------------------
# Pure-JAX reference (f32) and parameter init
# --------------------------------------------------------------------------------------

def _reference(features, params):
    N, C, H, W = features.shape
    pooled = jnp.mean(features.reshape(N, C, H * W).astype(jnp.float32), axis=-1)
    b = pooled @ params["w_fc"].T
    b = jnp.where(b >= 0, b, LRELU_SLOPE * b)
    mu = jnp.mean(b, axis=0, keepdims=True)
    var = jnp.mean((b - mu) ** 2, axis=0, keepdims=True)
    bn = (b - mu) / jnp.sqrt(var + BN_EPS) * params["gamma"]
    cls_out = bn @ params["w_cls"].T
    bn_n = bn / jnp.maximum(jnp.linalg.norm(bn, axis=1, keepdims=True), NORM_EPS)
    w_n = params["w_cls"] / jnp.maximum(
        jnp.linalg.norm(params["w_cls"], axis=1, keepdims=True), NORM_EPS)
    logits = bn_n @ w_n.T
    c = params["centers"]
    dist = (jnp.sum(bn * bn, axis=1, keepdims=True)
            + jnp.sum(c * c, axis=1)[None, :] - 2.0 * bn @ c.T)
    return pooled, bn, cls_out, logits, dist


def init_params(key, in_feat, reduction_dim, num_classes):
    k_fc, k_cls, k_ctr = jax.random.split(key, 3)
    # weights_init_kaiming (linear): kaiming_normal_, mode='fan_out' -> std = sqrt(2/fan_out)
    w_fc = jax.random.normal(k_fc, (reduction_dim, in_feat), jnp.float32) * jnp.sqrt(
        2.0 / reduction_dim)
    # classifier_norm (BN) weight = 1, bias frozen at 0
    gamma = jnp.ones((1, reduction_dim), jnp.float32)
    # weights_init_classifier: normal std=0.001
    w_cls = jax.random.normal(k_cls, (num_classes, reduction_dim), jnp.float32) * 0.001
    # MetaParam centers: randn(num_classes, reduction_dim)
    centers = jax.random.normal(k_ctr, (num_classes, reduction_dim), jnp.float32)
    return {"w_fc": w_fc, "gamma": gamma, "w_cls": w_cls, "centers": centers}


def _rel_err(a, b):
    return float(jnp.max(jnp.abs(a - b)) / (jnp.max(jnp.abs(b)) + 1e-12))


# TODO(synk): gempool/maxpool/clipavgpool pooling variants, arcSoftmax/circleSoftmax/amSoftmax
# classifier heads, the meta-learning `opt` fast-weight path, and eval-mode (running-stats)
# BatchNorm are not implemented (config fixed to 'avgpool' + 'linear', training mode).

if __name__ == "__main__":
    # Small shapes that still exercise the tiled grids and the class-padding path:
    #   C=384 -> 3 reduction tiles of 128; K=300 -> padded to 384 (one lane-dense class tile);
    #   HW=49 exercises the non-128 lane spatial axis.
    N, C, H, W = 8, 384, 7, 7
    R, K = 64, 300

    key = jax.random.PRNGKey(0)
    k_x, k_p = jax.random.split(key)
    features = jax.random.normal(k_x, (N, C, H, W), jnp.float32)
    params = init_params(k_p, C, R, K)

    ref_pooled, ref_bn, ref_cls, ref_logits, ref_dist = _reference(features, params)

    # --- exact-path check (f32 operands everywhere) ---
    out32 = metalearning_head(features, params, compute_dtype=jnp.float32)
    jax.block_until_ready(out32)
    assert out32["cls_outputs"].shape == (N, K)
    assert out32["pred_class_logits"].shape == (N, K)
    assert out32["center_distmat"].shape == (N, K)
    assert jnp.allclose(out32["pooled_features"], ref_pooled, atol=1e-5)
    assert jnp.allclose(out32["bn_features"], ref_bn, atol=1e-4)
    assert jnp.allclose(out32["cls_outputs"], ref_cls, atol=1e-4)
    assert jnp.allclose(out32["pred_class_logits"], ref_logits, atol=1e-4)
    assert jnp.allclose(out32["center_distmat"], ref_dist, atol=1e-3)

    # --- default perf path (bf16 MXU operands, f32 accumulation) ---
    out = metalearning_head(features, params)   # compute_dtype=bf16
    jax.block_until_ready(out)
    assert jnp.allclose(out["pooled_features"], ref_pooled, atol=1e-5)
    assert _rel_err(out["bn_features"], ref_bn) < 2e-2
    assert _rel_err(out["cls_outputs"], ref_cls) < 2e-2
    assert _rel_err(out["pred_class_logits"], ref_logits) < 2e-2
    assert _rel_err(out["center_distmat"], ref_dist) < 2e-2

    print("KERNEL_OK")
</pallas_src>

<mosaic_0001>
module attributes {stable_mosaic.version = 11 : i64} {
  func.func @_avgpool_kernel(%arg0: i32, %arg1: i32, %arg2: memref<8x128x49xf32, #tpu.memory_space<vmem>>, %arg3: memref<8x128xf32, #tpu.memory_space<vmem>>) attributes {dimension_semantics = [#tpu.dimension_semantics<parallel>, #tpu.dimension_semantics<parallel>], iteration_bounds = array<i64: 1, 3>, scalar_prefetch = 0 : i64, scratch_operands = 0 : i64, tpu.core_type = #tpu.core_type<tc>, window_params = [{transform_indices = @transform_0, window_bounds = array<i64: 8, 128, 49>}, {transform_indices = @transform_1, window_bounds = array<i64: 8, 128>}]} {
    %c0 = arith.constant 0 : index
    %c0_0 = arith.constant 0 : index
    %c0_1 = arith.constant 0 : index
    %0 = vector.load %arg2[%c0, %c0_0, %c0_1] : memref<8x128x49xf32, #tpu.memory_space<vmem>>, vector<8x128x49xf32>
    %cst = arith.constant dense<0.000000e+00> : vector<8x128xf32>
    %1 = vector.multi_reduction <add>, %0, %cst [2] : vector<8x128x49xf32> to vector<8x128xf32>
    %cst_2 = arith.constant 0.0204081628 : f32
    %2 = vector.broadcast %cst_2 : f32 to vector<8x128xf32>
    %3 = arith.mulf %1, %2 : vector<8x128xf32>
    %c0_3 = arith.constant 0 : index
    %c0_4 = arith.constant 0 : index
    %4 = vector.load %arg3[%c0_3, %c0_4] : memref<8x128xf32, #tpu.memory_space<vmem>>, vector<8x128xf32>
    tpu.vector_store %arg3[%c0_3, %c0_4], %3 {strides = array<i32>} : memref<8x128xf32, #tpu.memory_space<vmem>>, vector<8x128xf32>,
    return
  }
  func.func @transform_0(%arg0: i32, %arg1: i32) -> (i32, i32, i32) {
    %c0_i32 = arith.constant 0 : i32
    %c0_i32_0 = arith.constant 0 : i32
    return %arg0, %arg1, %c0_i32 : i32, i32, i32
  }
  func.func @transform_1(%arg0: i32, %arg1: i32) -> (i32, i32) {
    %c0_i32 = arith.constant 0 : i32
    return %arg0, %arg1 : i32, i32
  }
}

</mosaic_0001>

<bundles_post_ra>
// kernel: tpu_custom_call.1
= control target key start
LH: loop header
LB: loop body
LE: loop exit
PB: predicated region body
PF: predicated region fallthrough
CT: control target
= control target key end

     0   :  { %6 = vsyncpa [#allocation4], 0  ;;  %s3368_s0 = inlined_call_operand.vmem [shape: f32[8,384,49], index: 0, kind: input, shape index: {}]   ;;  %s3369_s1 = inlined_call_operand.hbm [shape: f32[8,384], index: 1, kind: output, shape index: {}]  }
   0x1   :  { %8 = vsyncpa [#allocation4 + $0x1], 0  ;;  %s2383_s6 = smov 0   ;;  %s2385_s7 = smov 0  }
   0x2   :  { %s2387_s8 = smov 0   ;;  %s2389_s9 = smov 0  }
   0x3   :  { %s2391_s10 = smov 0   ;;  %s2393_s11 = smov 0  }
   0x4 LB: > { %s2222_s12 = sadd.s32 4294967295, %s2370_s11   ;;  %s2223_s13 = sadd.s32 4294967294, %s2370_s11   ;;  %s2370_s11 = sphi %s2393_s11, %s14_s11   ;;  %s2366_s10 = sphi %s2391_s10, %s3382_s10   ;;  %s2362_s9 = sphi %s2389_s9, %s3381_s9   ;;  %s2358_s8 = sphi %s2387_s8, %s3380_s8   ;;  %s2354_s7 = sphi %s2385_s7, %s3379_s7   ;;  %s2350_s6 = sphi %s2383_s6, %s3378_s6  }
   0x5   : > { %s23_s14 = sadd.s32 1, %s2366_s10  ;;  %s35_s15 = sadd.s32 1, %s2358_s8 }
   0x6   : > { %p24_p0 = scmp.ge.s32.totalorder %s23_s14, 3  ;;  %p42_p1 = scmp.ne.s32.totalorder %s2358_s8, %s2354_s7 }
   0x7   : > { %p43_p2 = scmp.eq.s32.totalorder %s2370_s11, 0  ;;  %p74_p3 = scmp.eq.s32.totalorder %s2222_s12, 2 }
   0x8   : > { %s3384_s14 = smov (%p24_p0, %s23_s14), 0  ;;  %p79_p6 = scmp.ne.s32.totalorder %s2354_s7, %s2350_s6 }
   0x9   : > { %p44_p4 = por %p43_p2, %p42_p1  ;;  %p2422_p5 = por %p74_p3, %p42_p1 }
   0xa   : > { %s31_s17 = ssub.s32 %s2366_s10, %s3384_s14  ;;  %p80_p8 = scmp.eq.s32.totalorder %s2223_s13, 2 }
   0xb   : > { %p33_p7 = scmp.eq.s32.totalorder %s31_s17, 0  ;;  %p2225_p10 = scmp.ge.s32.totalorder %s2370_s11, 3 }
   0xc   : > { %p2433_p9 = por %p80_p8, %p79_p6 }
   0xd   : > { %s2431_s18 = scalar_select %p33_p7, %s2358_s8, %s35_s15  }
   0xe   : > { %96 = sbr.rel (%p2225_p10) target bundleno = 89 (0x59), region = 16 }
  0x15   : > { %99 = sbr.rel (!%p44_p4) target bundleno = 89 (0x59), region = 20  ;;  %s101_s20 = sand.u32 (%p44_p4), 1, %s2358_s8  }
  0x16   : > { %s2236_s21 = sshll.u32 (%p44_p4), %s2366_s10, 7  ;;  %s2226_s22 = sshll.u32 (%p44_p4), %s101_s20, 10 }
  0x17   : > { %s2443_s25 = scalar_lea.vmem (%p44_p4), %s3368_s0, %s2236_s21  ;;  %s2448_s26 = scalar_lea.vmem (%p44_p4), [#allocation2], %s2226_s22 }
  0x18   : > { %v391_v0 = vld [vmem:[%s2443_s25] sm:$0xff] (%p44_p4)  ;;  %v393_v1 = vld [vmem:[%s2443_s25 + $0x8] sm:$0xff] (%p44_p4)  ;;  %v395_v2 = vld [vmem:[%s2443_s25 + $0x10] sm:$0xff] (%p44_p4) }
  0x19   : > { %392 = vst [vmem:[%s2448_s26] sm:$0xff] (%p44_p4), %v391_v0  ;;  %394 = vst [vmem:[%s2448_s26 + $0x8] sm:$0xff] (%p44_p4), %v393_v1  ;;  %v397_v3 = vld [vmem:[%s2443_s25 + $0x18] sm:$0xff] (%p44_p4)  ;;  %v399_v4 = vld [vmem:[%s2443_s25 + $0x20] sm:$0xff] (%p44_p4) }
  0x1a   : > { %396 = vst [vmem:[%s2448_s26 + $0x10] sm:$0xff] (%p44_p4), %v395_v2  ;;  %v401_v5 = vld [vmem:[%s2443_s25 + $0x28] sm:$0xff] (%p44_p4)  ;;  %398 = vst [vmem:[%s2448_s26 + $0x18] sm:$0xff] (%p44_p4), %v397_v3  ;;  %v403_v6 = vld [vmem:[%s2443_s25 + $0x30] sm:$0xff] (%p44_p4) }
  0x1b   : > { %400 = vst [vmem:[%s2448_s26 + $0x20] sm:$0xff] (%p44_p4), %v399_v4  ;;  %402 = vst [vmem:[%s2448_s26 + $0x28] sm:$0xff] (%p44_p4), %v401_v5  ;;  %v405_v7 = vld [vmem:[%s2443_s25 + $0x38] sm:$0xff] (%p44_p4)  ;;  %v407_v8 = vld [vmem:[%s2443_s25 + $0x40] sm:$0xff] (%p44_p4) }
  0x1c   : > { %404 = vst [vmem:[%s2448_s26 + $0x30] sm:$0xff] %v403_v6  ;;  %406 = vst [vmem:[%s2448_s26 + $0x38] sm:$0xff] %v405_v7  ;;  %v409_v9 = vld [vmem:[%s2443_s25 + $0x48] sm:$0xff]  ;;  %v411_v10 = vld [vmem:[%s2443_s25 + $0x50] sm:$0xff] }
  0x1d   : > { %408 = vst [vmem:[%s2448_s26 + $0x40] sm:$0xff] %v407_v8  ;;  %v413_v11 = vld [vmem:[%s2443_s25 + $0x58] sm:$0xff]  ;;  %410 = vst [vmem:[%s2448_s26 + $0x48] sm:$0xff] %v409_v9  ;;  %v415_v12 = vld [vmem:[%s2443_s25 + $0x60] sm:$0xff] }
  0x1e   : > { %412 = vst [vmem:[%s2448_s26 + $0x50] sm:$0xff] %v411_v10  ;;  %414 = vst [vmem:[%s2448_s26 + $0x58] sm:$0xff] %v413_v11  ;;  %v417_v13 = vld [vmem:[%s2443_s25 + $0x68] sm:$0xff]  ;;  %v419_v14 = vld [vmem:[%s2443_s25 + $0x70] sm:$0xff] }
  0x1f   : > { %416 = vst [vmem:[%s2448_s26 + $0x60] sm:$0xff] %v415_v12  ;;  %418 = vst [vmem:[%s2448_s26 + $0x68] sm:$0xff] %v417_v13  ;;  %v421_v15 = vld [vmem:[%s2443_s25 + $0x78] sm:$0xff]  ;;  %v423_v16 = vld [vmem:[%s2443_s25 + $0x180] sm:$0xff] }
  0x20   : > { %420 = vst [vmem:[%s2448_s26 + $0x70] sm:$0xff] %v419_v14  ;;  %v425_v17 = vld [vmem:[%s2443_s25 + $0x188] sm:$0xff]  ;;  %422 = vst [vmem:[%s2448_s26 + $0x78] sm:$0xff] %v421_v15  ;;  %v427_v18 = vld [vmem:[%s2443_s25 + $0x190] sm:$0xff] }
  0x21   : > { %424 = vst [vmem:[%s2448_s26 + $0x80] sm:$0xff] %v423_v16  ;;  %426 = vst [vmem:[%s2448_s26 + $0x88] sm:$0xff] %v425_v17  ;;  %v429_v19 = vld [vmem:[%s2443_s25 + $0x198] sm:$0xff]  ;;  %v431_v20 = vld [vmem:[%s2443_s25 + $0x1a0] sm:$0xff] }
  0x22   : > { %428 = vst [vmem:[%s2448_s26 + $0x90] sm:$0xff] %v427_v18  ;;  %430 = vst [vmem:[%s2448_s26 + $0x98] sm:$0xff] %v429_v19  ;;  %v433_v21 = vld [vmem:[%s2443_s25 + $0x1a8] sm:$0xff]  ;;  %v435_v22 = vld [vmem:[%s2443_s25 + $0x1b0] sm:$0xff] }
  0x23   : > { %432 = vst [vmem:[%s2448_s26 + $0xa0] sm:$0xff] %v431_v20  ;;  %v437_v23 = vld [vmem:[%s2443_s25 + $0x1b8] sm:$0xff]  ;;  %434 = vst [vmem:[%s2448_s26 + $0xa8] sm:$0xff] %v433_v21  ;;  %v439_v24 = vld [vmem:[%s2443_s25 + $0x1c0] sm:$0xff] }
  0x24   : > { %436 = vst [vmem:[%s2448_s26 + $0xb0] sm:$0xff] %v435_v22  ;;  %438 = vst [vmem:[%s2448_s26 + $0xb8] sm:$0xff] %v437_v23  ;;  %v441_v25 = vld [vmem:[%s2443_s25 + $0x1c8] sm:$0xff]  ;;  %v443_v26 = vld [vmem:[%s2443_s25 + $0x1d0] sm:$0xff] }
  0x25   : > { %440 = vst [vmem:[%s2448_s26 + $0xc0] sm:$0xff] %v439_v24  ;;  %442 = vst [vmem:[%s2448_s26 + $0xc8] sm:$0xff] %v441_v25  ;;  %v445_v27 = vld [vmem:[%s2443_s25 + $0x1d8] sm:$0xff]  ;;  %v447_v28 = vld [vmem:[%s2443_s25 + $0x1e0] sm:$0xff] }
  0x26   : > { %444 = vst [vmem:[%s2448_s26 + $0xd0] sm:$0xff] %v443_v26  ;;  %v449_v29 = vld [vmem:[%s2443_s25 + $0x1e8] sm:$0xff]  ;;  %446 = vst [vmem:[%s2448_s26 + $0xd8] sm:$0xff] %v445_v27  ;;  %v451_v30 = vld [vmem:[%s2443_s25 + $0x1f0] sm:$0xff] }
  0x27   : > { %448 = vst [vmem:[%s2448_s26 + $0xe0] sm:$0xff] %v447_v28  ;;  %450 = vst [vmem:[%s2448_s26 + $0xe8] sm:$0xff] %v449_v29  ;;  %v453_v31 = vld [vmem:[%s2443_s25 + $0x1f8] sm:$0xff]  ;;  %v455_v32 = vld [vmem:[%s2443_s25 + $0x300] sm:$0xff] }
  0x28   : > { %452 = vst [vmem:[%s2448_s26 + $0xf0] sm:$0xff] %v451_v30  ;;  %454 = vst [vmem:[%s2448_s26 + $0xf8] sm:$0xff] %v453_v31  ;;  %v457_v33 = vld [vmem:[%s2443_s25 + $0x308] sm:$0xff]  ;;  %v459_v34 = vld [vmem:[%s2443_s25 + $0x310] sm:$0xff] }
  0x29   : > { %456 = vst [vmem:[%s2448_s26 + $0x100] sm:$0xff] %v455_v32  ;;  %v461_v35 = vld [vmem:[%s2443_s25 + $0x318] sm:$0xff]  ;;  %458 = vst [vmem:[%s2448_s26 + $0x108] sm:$0xff] %v457_v33  ;;  %v463_v36 = vld [vmem:[%s2443_s25 + $0x320] sm:$0xff] }
  0x2a   : > { %460 = vst [vmem:[%s2448_s26 + $0x110] sm:$0xff] %v459_v34  ;;  %462 = vst [vmem:[%s2448_s26 + $0x118] sm:$0xff] %v461_v35  ;;  %v465_v37 = vld [vmem:[%s2443_s25 + $0x328] sm:$0xff]  ;;  %v467_v38 = vld [vmem:[%s2443_s25 + $0x330] sm:$0xff] }
  0x2b   : > { %464 = vst [vmem:[%s2448_s26 + $0x120] sm:$0xff] %v463_v36  ;;  %466 = vst [vmem:[%s2448_s26 + $0x128] sm:$0xff] %v465_v37  ;;  %v469_v39 = vld [vmem:[%s2443_s25 + $0x338] sm:$0xff]  ;;  %v471_v40 = vld [vmem:[%s2443_s25 + $0x340] sm:$0xff] }
  0x2c   : > { %468 = vst [vmem:[%s2448_s26 + $0x130] sm:$0xff] %v467_v38  ;;  %v473_v41 = vld [vmem:[%s2443_s25 + $0x348] sm:$0xff]  ;;  %470 = vst [vmem:[%s2448_s26 + $0x138] sm:$0xff] %v469_v39  ;;  %v475_v42 = vld [vmem:[%s2443_s25 + $0x350] sm:$0xff] }
  0x2d   : > { %472 = vst [vmem:[%s2448_s26 + $0x140] sm:$0xff] %v471_v40  ;;  %474 = vst [vmem:[%s2448_s26 + $0x148] sm:$0xff] %v473_v41  ;;  %v477_v43 = vld [vmem:[%s2443_s25 + $0x358] sm:$0xff]  ;;  %v479_v44 = vld [vmem:[%s2443_s25 + $0x360] sm:$0xff] }
  0x2e   : > { %476 = vst [vmem:[%s2448_s26 + $0x150] sm:$0xff] %v475_v42  ;;  %478 = vst [vmem:[%s2448_s26 + $0x158] sm:$0xff] %v477_v43  ;;  %v481_v45 = vld [vmem:[%s2443_s25 + $0x368] sm:$0xff]  ;;  %v483_v46 = vld [vmem:[%s2443_s25 + $0x370] sm:$0xff] }
  0x2f   : > { %480 = vst [vmem:[%s2448_s26 + $0x160] sm:$0xff] %v479_v44  ;;  %v485_v47 = vld [vmem:[%s2443_s25 + $0x378] sm:$0xff]  ;;  %482 = vst [vmem:[%s2448_s26 + $0x168] sm:$0xff] %v481_v45  ;;  %v487_v48 = vld [vmem:[%s2443_s25 + $0x480] sm:$0xff] }
  0x30   : > { %484 = vst [vmem:[%s2448_s26 + $0x170] sm:$0xff] %v483_v46  ;;  %486 = vst [vmem:[%s2448_s26 + $0x178] sm:$0xff] %v485_v47  ;;  %v489_v49 = vld [vmem:[%s2443_s25 + $0x488] sm:$0xff]  ;;  %v491_v50 = vld [vmem:[%s2443_s25 + $0x490] sm:$0xff] }
  0x31   : > { %488 = vst [vmem:[%s2448_s26 + $0x180] sm:$0xff] %v487_v48  ;;  %490 = vst [vmem:[%s2448_s26 + $0x188] sm:$0xff] %v489_v49  ;;  %v493_v51 = vld [vmem:[%s2443_s25 + $0x498] sm:$0xff]  ;;  %v495_v52 = vld [vmem:[%s2443_s25 + $0x4a0] sm:$0xff] }
  0x32   : > { %492 = vst [vmem:[%s2448_s26 + $0x190] sm:$0xff] %v491_v50  ;;  %v497_v53 = vld [vmem:[%s2443_s25 + $0x4a8] sm:$0xff]  ;;  %494 = vst [vmem:[%s2448_s26 + $0x198] sm:$0xff] %v493_v51  ;;  %v499_v54 = vld [vmem:[%s2443_s25 + $0x4b0] sm:$0xff] }
  0x33   : > { %496 = vst [vmem:[%s2448_s26 + $0x1a0] sm:$0xff] %v495_v52  ;;  %498 = vst [vmem:[%s2448_s26 + $0x1a8] sm:$0xff] %v497_v53  ;;  %v501_v55 = vld [vmem:[%s2443_s25 + $0x4b8] sm:$0xff]  ;;  %v503_v56 = vld [vmem:[%s2443_s25 + $0x4c0] sm:$0xff] }
  0x34   : > { %500 = vst [vmem:[%s2448_s26 + $0x1b0] sm:$0xff] %v499_v54  ;;  %502 = vst [vmem:[%s2448_s26 + $0x1b8] sm:$0xff] %v501_v55  ;;  %v505_v57 = vld [vmem:[%s2443_s25 + $0x4c8] sm:$0xff]  ;;  %v507_v58 = vld [vmem:[%s2443_s25 + $0x4d0] sm:$0xff] }
  0x35   : > { %504 = vst [vmem:[%s2448_s26 + $0x1c0] sm:$0xff] %v503_v56  ;;  %v509_v59 = vld [vmem:[%s2443_s25 + $0x4d8] sm:$0xff]  ;;  %506 = vst [vmem:[%s2448_s26 + $0x1c8] sm:$0xff] %v505_v57  ;;  %v511_v60 = vld [vmem:[%s2443_s25 + $0x4e0] sm:$0xff] }
  0x36   : > { %508 = vst [vmem:[%s2448_s26 + $0x1d0] sm:$0xff] %v507_v58  ;;  %510 = vst [vmem:[%s2448_s26 + $0x1d8] sm:$0xff] %v509_v59  ;;  %v513_v61 = vld [vmem:[%s2443_s25 + $0x4e8] sm:$0xff]  ;;  %v515_v62 = vld [vmem:[%s2443_s25 + $0x4f0] sm:$0xff] }
  0x37   : > { %512 = vst [vmem:[%s2448_s26 + $0x1e0] sm:$0xff] %v511_v60  ;;  %514 = vst [vmem:[%s2448_s26 + $0x1e8] sm:$0xff] %v513_v61  ;;  %v517_v63 = vld [vmem:[%s2443_s25 + $0x4f8] sm:$0xff]  ;;  %v519_v0 = vld [vmem:[%s2443_s25 + $0x600] sm:$0xff] }
  0x38   : > { %516 = vst [vmem:[%s2448_s26 + $0x1f0] sm:$0xff] %v515_v62  ;;  %v521_v1 = vld [vmem:[%s2443_s25 + $0x608] sm:$0xff]  ;;  %518 = vst [vmem:[%s2448_s26 + $0x1f8] sm:$0xff] %v517_v63  ;;  %v523_v2 = vld [vmem:[%s2443_s25 + $0x610] sm:$0xff] }
  0x39   : > { %520 = vst [vmem:[%s2448_s26 + $0x200] sm:$0xff] %v519_v0  ;;  %522 = vst [vmem:[%s2448_s26 + $0x208] sm:$0xff] %v521_v1  ;;  %v525_v3 = vld [vmem:[%s2443_s25 + $0x618] sm:$0xff]  ;;  %v527_v4 = vld [vmem:[%s2443_s25 + $0x620] sm:$0xff] }
  0x3a   : > { %524 = vst [vmem:[%s2448_s26 + $0x210] sm:$0xff] %v523_v2  ;;  %526 = vst [vmem:[%s2448_s26 + $0x218] sm:$0xff] %v525_v3  ;;  %v529_v5 = vld [vmem:[%s2443_s25 + $0x628] sm:$0xff]  ;;  %v531_v6 = vld [vmem:[%s2443_s25 + $0x630] sm:$0xff] }
  0x3b   : > { %528 = vst [vmem:[%s2448_s26 + $0x220] sm:$0xff] %v527_v4  ;;  %v533_v7 = vld [vmem:[%s2443_s25 + $0x638] sm:$0xff]  ;;  %530 = vst [vmem:[%s2448_s26 + $0x228] sm:$0xff] %v529_v5  ;;  %v535_v8 = vld [vmem:[%s2443_s25 + $0x640] sm:$0xff] }
  0x3c   : > { %532 = vst [vmem:[%s2448_s26 + $0x230] sm:$0xff] %v531_v6  ;;  %534 = vst [vmem:[%s2448_s26 + $0x238] sm:$0xff] %v533_v7  ;;  %v537_v9 = vld [vmem:[%s2443_s25 + $0x648] sm:$0xff]  ;;  %v539_v10 = vld [vmem:[%s2443_s25 + $0x650] sm:$0xff] }
  0x3d   : > { %536 = vst [vmem:[%s2448_s26 + $0x240] sm:$0xff] %v535_v8  ;;  %538 = vst [vmem:[%s2448_s26 + $0x248] sm:$0xff] %v537_v9  ;;  %v541_v11 = vld [vmem:[%s2443_s25 + $0x658] sm:$0xff]  ;;  %v543_v12 = vld [vmem:[%s2443_s25 + $0x660] sm:$0xff] }
  0x3e   : > { %540 = vst [vmem:[%s2448_s26 + $0x250] sm:$0xff] %v539_v10  ;;  %v545_v13 = vld [vmem:[%s2443_s25 + $0x668] sm:$0xff]  ;;  %542 = vst [vmem:[%s2448_s26 + $0x258] sm:$0xff] %v541_v11  ;;  %v547_v14 = vld [vmem:[%s2443_s25 + $0x670] sm:$0xff] }
  0x3f   : > { %544 = vst [vmem:[%s2448_s26 + $0x260] sm:$0xff] %v543_v12  ;;  %546 = vst [vmem:[%s2448_s26 + $0x268] sm:$0xff] %v545_v13  ;;  %v549_v15 = vld [vmem:[%s2443_s25 + $0x678] sm:$0xff]  ;;  %v551_v16 = vld [vmem:[%s2443_s25 + $0x780] sm:$0xff] }
  0x40   : > { %548 = vst [vmem:[%s2448_s26 + $0x270] sm:$0xff] %v547_v14  ;;  %550 = vst [vmem:[%s2448_s26 + $0x278] sm:$0xff] %v549_v15  ;;  %v553_v17 = vld [vmem:[%s2443_s25 + $0x788] sm:$0xff]  ;;  %v555_v18 = vld [vmem:[%s2443_s25 + $0x790] sm:$0xff] }
  0x41   : > { %552 = vst [vmem:[%s2448_s26 + $0x280] sm:$0xff] %v551_v16  ;;  %v557_v19 = vld [vmem:[%s2443_s25 + $0x798] sm:$0xff]  ;;  %554 = vst [vmem:[%s2448_s26 + $0x288] sm:$0xff] %v553_v17  ;;  %v559_v20 = vld [vmem:[%s2443_s25 + $0x7a0] sm:$0xff] }
  0x42   : > { %556 = vst [vmem:[%s2448_s26 + $0x290] sm:$0xff] %v555_v18  ;;  %558 = vst [vmem:[%s2448_s26 + $0x298] sm:$0xff] %v557_v19  ;;  %v561_v21 = vld [vmem:[%s2443_s25 + $0x7a8] sm:$0xff]  ;;  %v563_v22 = vld [vmem:[%s2443_s25 + $0x7b0] sm:$0xff] }
  0x43   : > { %560 = vst [vmem:[%s2448_s26 + $0x2a0] sm:$0xff] %v559_v20  ;;  %562 = vst [vmem:[%s2448_s26 + $0x2a8] sm:$0xff] %v561_v21  ;;  %v565_v23 = vld [vmem:[%s2443_s25 + $0x7b8] sm:$0xff]  ;;  %v567_v24 = vld [vmem:[%s2443_s25 + $0x7c0] sm:$0xff] }
  0x44   : > { %564 = vst [vmem:[%s2448_s26 + $0x2b0] sm:$0xff] %v563_v22  ;;  %v569_v25 = vld [vmem:[%s2443_s25 + $0x7c8] sm:$0xff]  ;;  %566 = vst [vmem:[%s2448_s26 + $0x2b8] sm:$0xff] %v565_v23  ;;  %v571_v26 = vld [vmem:[%s2443_s25 + $0x7d0] sm:$0xff] }
  0x45   : > { %568 = vst [vmem:[%s2448_s26 + $0x2c0] sm:$0xff] %v567_v24  ;;  %570 = vst [vmem:[%s2448_s26 + $0x2c8] sm:$0xff] %v569_v25  ;;  %v573_v27 = vld [vmem:[%s2443_s25 + $0x7d8] sm:$0xff]  ;;  %v575_v28 = vld [vmem:[%s2443_s25 + $0x7e0] sm:$0xff] }
  0x46   : > { %572 = vst [vmem:[%s2448_s26 + $0x2d0] sm:$0xff] %v571_v26  ;;  %574 = vst [vmem:[%s2448_s26 + $0x2d8] sm:$0xff] %v573_v27  ;;  %v577_v29 = vld [vmem:[%s2443_s25 + $0x7e8] sm:$0xff]  ;;  %v579_v30 = vld [vmem:[%s2443_s25 + $0x7f0] sm:$0xff] }
  0x47   : > { %576 = vst [vmem:[%s2448_s26 + $0x2e0] sm:$0xff] %v575_v28  ;;  %v581_v31 = vld [vmem:[%s2443_s25 + $0x7f8] sm:$0xff]  ;;  %578 = vst [vmem:[%s2448_s26 + $0x2e8] sm:$0xff] %v577_v29  ;;  %v583_v32 = vld [vmem:[%s2443_s25 + $0x900] sm:$0xff] }
  0x48   : > { %580 = vst [vmem:[%s2448_s26 + $0x2f0] sm:$0xff] %v579_v30  ;;  %582 = vst [vmem:[%s2448_s26 + $0x2f8] sm:$0xff] %v581_v31  ;;  %v585_v33 = vld [vmem:[%s2443_s25 + $0x908] sm:$0xff]  ;;  %v587_v34 = vld [vmem:[%s2443_s25 + $0x910] sm:$0xff] }
  0x49   : > { %584 = vst [vmem:[%s2448_s26 + $0x300] sm:$0xff] %v583_v32  ;;  %586 = vst [vmem:[%s2448_s26 + $0x308] sm:$0xff] %v585_v33  ;;  %v589_v35 = vld [vmem:[%s2443_s25 + $0x918] sm:$0xff]  ;;  %v591_v36 = vld [vmem:[%s2443_s25 + $0x920] sm:$0xff] }
  0x4a   : > { %588 = vst [vmem:[%s2448_s26 + $0x310] sm:$0xff] %v587_v34  ;;  %v593_v37 = vld [vmem:[%s2443_s25 + $0x928] sm:$0xff]  ;;  %590 = vst [vmem:[%s2448_s26 + $0x318] sm:$0xff] %v589_v35  ;;  %v595_v38 = vld [vmem:[%s2443_s25 + $0x930] sm:$0xff] }
  0x4b   : > { %592 = vst [vmem:[%s2448_s26 + $0x320] sm:$0xff] %v591_v36  ;;  %594 = vst [vmem:[%s2448_s26 + $0x328] sm:$0xff] %v593_v37  ;;  %v597_v39 = vld [vmem:[%s2443_s25 + $0x938] sm:$0xff]  ;;  %v599_v40 = vld [vmem:[%s2443_s25 + $0x940] sm:$0xff] }
  0x4c   : > { %596 = vst [vmem:[%s2448_s26 + $0x330] sm:$0xff] %v595_v38  ;;  %598 = vst [vmem:[%s2448_s26 + $0x338] sm:$0xff] %v597_v39  ;;  %v601_v41 = vld [vmem:[%s2443_s25 + $0x948] sm:$0xff]  ;;  %v603_v42 = vld [vmem:[%s2443_s25 + $0x950] sm:$0xff] }
  0x4d   : > { %600 = vst [vmem:[%s2448_s26 + $0x340] sm:$0xff] %v599_v40  ;;  %v605_v43 = vld [vmem:[%s2443_s25 + $0x958] sm:$0xff]  ;;  %602 = vst [vmem:[%s2448_s26 + $0x348] sm:$0xff] %v601_v41  ;;  %v607_v44 = vld [vmem:[%s2443_s25 + $0x960] sm:$0xff] }
  0x4e   : > { %604 = vst [vmem:[%s2448_s26 + $0x350] sm:$0xff] %v603_v42  ;;  %606 = vst [vmem:[%s2448_s26 + $0x358] sm:$0xff] %v605_v43  ;;  %v609_v45 = vld [vmem:[%s2443_s25 + $0x968] sm:$0xff]  ;;  %v611_v46 = vld [vmem:[%s2443_s25 + $0x970] sm:$0xff] }
  0x4f   : > { %608 = vst [vmem:[%s2448_s26 + $0x360] sm:$0xff] %v607_v44  ;;  %610 = vst [vmem:[%s2448_s26 + $0x368] sm:$0xff] %v609_v45  ;;  %v613_v47 = vld [vmem:[%s2443_s25 + $0x978] sm:$0xff]  ;;  %v615_v48 = vld [vmem:[%s2443_s25 + $0xa80] sm:$0xff] }
  0x50   : > { %612 = vst [vmem:[%s2448_s26 + $0x370] sm:$0xff] %v611_v46  ;;  %v617_v49 = vld [vmem:[%s2443_s25 + $0xa88] sm:$0xff]  ;;  %614 = vst [vmem:[%s2448_s26 + $0x378] sm:$0xff] %v613_v47  ;;  %v619_v50 = vld [vmem:[%s2443_s25 + $0xa90] sm:$0xff] }
  0x51   : > { %616 = vst [vmem:[%s2448_s26 + $0x380] sm:$0xff] %v615_v48  ;;  %618 = vst [vmem:[%s2448_s26 + $0x388] sm:$0xff] %v617_v49  ;;  %v621_v51 = vld [vmem:[%s2443_s25 + $0xa98] sm:$0xff]  ;;  %v623_v52 = vld [vmem:[%s2443_s25 + $0xaa0] sm:$0xff] }
  0x52   : > { %620 = vst [vmem:[%s2448_s26 + $0x390] sm:$0xff] %v619_v50  ;;  %622 = vst [vmem:[%s2448_s26 + $0x398] sm:$0xff] %v621_v51  ;;  %v625_v53 = vld [vmem:[%s2443_s25 + $0xaa8] sm:$0xff]  ;;  %v627_v54 = vld [vmem:[%s2443_s25 + $0xab0] sm:$0xff] }
  0x53   : > { %624 = vst [vmem:[%s2448_s26 + $0x3a0] sm:$0xff] %v623_v52  ;;  %v629_v55 = vld [vmem:[%s2443_s25 + $0xab8] sm:$0xff]  ;;  %626 = vst [vmem:[%s2448_s26 + $0x3a8] sm:$0xff] %v625_v53  ;;  %v631_v56 = vld [vmem:[%s2443_s25 + $0xac0] sm:$0xff] }
  0x54   : > { %628 = vst [vmem:[%s2448_s26 + $0x3b0] sm:$0xff] %v627_v54  ;;  %630 = vst [vmem:[%s2448_s26 + $0x3b8] sm:$0xff] %v629_v55  ;;  %v633_v57 = vld [vmem:[%s2443_s25 + $0xac8] sm:$0xff]  ;;  %v635_v58 = vld [vmem:[%s2443_s25 + $0xad0] sm:$0xff] }
  0x55   : > { %632 = vst [vmem:[%s2448_s26 + $0x3c0] sm:$0xff] %v631_v56  ;;  %634 = vst [vmem:[%s2448_s26 + $0x3c8] sm:$0xff] %v633_v57  ;;  %v637_v59 = vld [vmem:[%s2443_s25 + $0xad8] sm:$0xff]  ;;  %v639_v60 = vld [vmem:[%s2443_s25 + $0xae0] sm:$0xff] }
  0x56   : > { %636 = vst [vmem:[%s2448_s26 + $0x3d0] sm:$0xff] %v635_v58  ;;  %v641_v61 = vld [vmem:[%s2443_s25 + $0xae8] sm:$0xff]  ;;  %638 = vst [vmem:[%s2448_s26 + $0x3d8] sm:$0xff] %v637_v59  ;;  %v643_v62 = vld [vmem:[%s2443_s25 + $0xaf0] sm:$0xff] }
  0x57   : > { %640 = vst [vmem:[%s2448_s26 + $0x3e0] sm:$0xff] %v639_v60  ;;  %642 = vst [vmem:[%s2448_s26 + $0x3e8] sm:$0xff] %v641_v61  ;;  %v645_v63 = vld [vmem:[%s2443_s25 + $0xaf8] sm:$0xff] }
  0x58   : > { %644 = vst [vmem:[%s2448_s26 + $0x3f0] sm:$0xff] %v643_v62  ;;  %646 = vst [vmem:[%s2448_s26 + $0x3f8] sm:$0xff] %v645_v63 }
  0x59 PF: > { %p2229_p11 = scmp.ge.s32.totalorder %s2370_s11, 1  ;;  %p651_p12 = scmp.lt.s32.totalorder %s2370_s11, 4 }
  0x5b   : > { %p652_p13 = pnand %p2229_p11, %p651_p12 }
  0x5c   : > { %s2706_s27 = sand.u32 (!%p652_p13), 1, %s2354_s7   ;;  %vm807_vm0 = vcmask (!%p652_p13), 400384   ;;  %vm1459_vm1 = vcmask (!%p652_p13), 130112   ;;  %vm1466_vm2 = vcmask (!%p652_p13), 195712   ;;  %vm1473_vm3 = vcmask (!%p652_p13), 261312   ;;  %s2233_s2 = sshll.u32 (!%p652_p13), %s2362_s9, 7 }
  0x5d   : > { %655 = sbr.rel (%p652_p13) target bundleno = 512 (0x200), region = 58  ;;  %s2230_s28 = sshll.u32 (!%p652_p13), %s2706_s27, 10  ;;  %vm1480_vm4 = vcmask (!%p652_p13), 326912   ;;  %vm1487_vm5 = vcmask (!%p652_p13), 392512   ;;  %vm1494_vm6 = vcmask (!%p652_p13), 458112   ;;  %vm1501_vm7 = vcmask (!%p652_p13), 523712  }
  0x5e   : > { %s2709_s29 = scalar_lea.vmem (!%p652_p13), [#allocation2], %s2230_s28  ;;  %vm1508_vm8 = vcmask (!%p652_p13), 589312   ;;  %vm1515_vm9 = vcmask (!%p652_p13), 654912   ;;  %vm1522_vm10 = vcmask (!%p652_p13), 720512   ;;  %vm3370_vm11 = vcmask (!%p652_p13), 786112   ;;  %s2231_s30 = sshll.u32 (!%p652_p13), %s2706_s27, 3 }
  0x5f   : > { %v681_v0 = vld [vmem:[%s2709_s29 + $0x10] sm:$0xff] (!%p652_p13)  ;;  %v679_v1 = vld [vmem:[%s2709_s29] sm:$0xff] (!%p652_p13)  ;;  %v682_v2 = vld [vmem:[%s2709_s29 + $0x18] sm:$0xff] (!%p652_p13)  ;;  %vm1536_vm12 = vcmask (!%p652_p13), 851712   ;;  %vm1543_vm13 = vcmask (!%p652_p13), 917312   ;;  %vm1550_vm14 = vcmask (!%p652_p13), 982912   ;;  %s3320_s13 = scalar_lea.hbm (!%p652_p13), %s3369_s1, %s2233_s2 }
  0x60   : > { %v814_v3 = vsel (!%p652_p13), %vm807_vm0, %v681_v0, 0.0  ;;  %v808_v4 = vsel (!%p652_p13), %vm807_vm0, %v679_v1, 0.0  ;;  %v680_v5 = vld [vmem:[%s2709_s29 + $0x8] sm:$0xff] (!%p652_p13)  ;;  %v817_v6 = vsel (!%p652_p13), %vm807_vm0, %v682_v2, 0.0  ;;  %v683_v9 = vld [vmem:[%s2709_s29 + $0x20] sm:$0xff] (!%p652_p13)  ;;  %v686_v12 = vld [vmem:[%s2709_s29 + $0x38] sm:$0xff] (!%p652_p13) }
  0x61   : > { %815 = vadd.xlane.f32.xlu1 (!%p652_p13), %v814_v3  ;;  %809 = vadd.xlane.f32.xlu0 (!%p652_p13), %v808_v4  ;;  %v811_v7 = vsel (!%p652_p13), %vm807_vm0, %v680_v5, 0.0  ;;  %v684_v8 = vld [vmem:[%s2709_s29 + $0x28] sm:$0xff] (!%p652_p13)  ;;  %v820_v11 = vsel (!%p652_p13), %vm807_vm0, %v683_v9, 0.0  ;;  %v685_v13 = vld [vmem:[%s2709_s29 + $0x30] sm:$0xff] (!%p652_p13)  ;;  %v829_v14 = vsel (!%p652_p13), %vm807_vm0, %v686_v12, 0.0  ;;  %v687_v17 = vld [vmem:[%s2709_s29 + $0x40] sm:$0xff] (!%p652_p13) }
  0x62   : > { %v823_v10 = vsel (!%p652_p13), %vm807_vm0, %v684_v8, 0.0  ;;  %v826_v15 = vsel (!%p652_p13), %vm807_vm0, %v685_v13, 0.0  ;;  %v688_v16 = vld [vmem:[%s2709_s29 + $0x48] sm:$0xff] (!%p652_p13)  ;;  %v832_v19 = vsel (!%p652_p13), %vm807_vm0, %v687_v17, 0.0  ;;  %v690_v20 = vld [vmem:[%s2709_s29 + $0x58] sm:$0xff] (!%p652_p13)  ;;  %v689_v21 = vld [vmem:[%s2709_s29 + $0x50] sm:$0xff] (!%p652_p13) }
  0x63   : > { %v835_v18 = vsel (!%p652_p13), %vm807_vm0, %v688_v16, 0.0  ;;  %v841_v22 = vsel (!%p652_p13), %vm807_vm0, %v690_v20, 0.0  ;;  %v838_v23 = vsel (!%p652_p13), %vm807_vm0, %v689_v21, 0.0  ;;  %v692_v24 = vld [vmem:[%s2709_s29 + $0x68] sm:$0xff] (!%p652_p13)  ;;  %v691_v25 = vld [vmem:[%s2709_s29 + $0x60] sm:$0xff] (!%p652_p13)  ;;  %v694_v28 = vld [vmem:[%s2709_s29 + $0x78] sm:$0xff] (!%p652_p13) }
  0x64   : > { %v847_v26 = vsel %vm807_vm0, %v692_v24, 0.0  ;;  %v844_v27 = vsel %vm807_vm0, %v691_v25, 0.0  ;;  %v693_v29 = vld [vmem:[%s2709_s29 + $0x70] sm:$0xff]  ;;  %v853_v30 = vsel %vm807_vm0, %v694_v28, 0.0  ;;  %v696_v32 = vld [vmem:[%s2709_s29 + $0x88] sm:$0xff]  ;;  %v695_v33 = vld [vmem:[%s2709_s29 + $0x80] sm:$0xff] }
  0x65   : > { %818 = vadd.xlane.f32.xlu1 %v817_v6  ;;  %812 = vadd.xlane.f32.xlu0 %v811_v7  ;;  %v850_v31 = vsel %vm807_vm0, %v693_v29, 0.0  ;;  %v859_v34 = vsel %vm807_vm0, %v696_v32, 0.0  ;;  %v856_v35 = vsel %vm807_vm0, %v695_v33, 0.0  ;;  %v698_v36 = vld [vmem:[%s2709_s29 + $0x98] sm:$0xff]  ;;  %v697_v37 = vld [vmem:[%s2709_s29 + $0x90] sm:$0xff]  ;;  %v700_v40 = vld [vmem:[%s2709_s29 + $0xa8] sm:$0xff] }
  0x66   : > { %v865_v38 = vsel %vm807_vm0, %v698_v36, 0.0  ;;  %v862_v39 = vsel %vm807_vm0, %v697_v37, 0.0  ;;  %v699_v41 = vld [vmem:[%s2709_s29 + $0xa0] sm:$0xff]  ;;  %v871_v42 = vsel %vm807_vm0, %v700_v40, 0.0  ;;  %v702_v44 = vld [vmem:[%s2709_s29 + $0xb8] sm:$0xff]  ;;  %v701_v45 = vld [vmem:[%s2709_s29 + $0xb0] sm:$0xff] }
  0x67   : > { %v868_v43 = vsel %vm807_vm0, %v699_v41, 0.0  ;;  %v877_v46 = vsel %vm807_vm0, %v702_v44, 0.0  ;;  %v874_v47 = vsel %vm807_vm0, %v701_v45, 0.0  ;;  %v704_v48 = vld [vmem:[%s2709_s29 + $0xc8] sm:$0xff]  ;;  %v703_v49 = vld [vmem:[%s2709_s29 + $0xc0] sm:$0xff]  ;;  %v706_v52 = vld [vmem:[%s2709_s29 + $0xd8] sm:$0xff] }
  0x68   : > { %v883_v50 = vsel %vm807_vm0, %v704_v48, 0.0  ;;  %v880_v51 = vsel %vm807_vm0, %v703_v49, 0.0  ;;  %v705_v53 = vld [vmem:[%s2709_s29 + $0xd0] sm:$0xff]  ;;  %v889_v54 = vsel %vm807_vm0, %v706_v52, 0.0  ;;  %v708_v56 = vld [vmem:[%s2709_s29 + $0xe8] sm:$0xff]  ;;  %v707_v57 = vld [vmem:[%s2709_s29 + $0xe0] sm:$0xff] }
  0x69   : > { %824 = vadd.xlane.f32.xlu1 %v823_v10  ;;  %821 = vadd.xlane.f32.xlu0 %v820_v11  ;;  %v886_v55 = vsel %vm807_vm0, %v705_v53, 0.0  ;;  %v895_v58 = vsel %vm807_vm0, %v708_v56, 0.0  ;;  %v892_v59 = vsel %vm807_vm0, %v707_v57, 0.0  ;;  %v710_v60 = vld [vmem:[%s2709_s29 + $0xf8] sm:$0xff]  ;;  %v709_v61 = vld [vmem:[%s2709_s29 + $0xf0] sm:$0xff]  ;;  %v712_v0 = vld [vmem:[%s2709_s29 + $0x108] sm:$0xff] }
  0x6a   : > { %v901_v62 = vsel %vm807_vm0, %v710_v60, 0.0  ;;  %v898_v63 = vsel %vm807_vm0, %v709_v61, 0.0  ;;  %v711_v1 = vld [vmem:[%s2709_s29 + $0x100] sm:$0xff]  ;;  %v907_v2 = vsel %vm807_vm0, %v712_v0, 0.0  ;;  %v714_v4 = vld [vmem:[%s2709_s29 + $0x118] sm:$0xff]  ;;  %v713_v5 = vld [vmem:[%s2709_s29 + $0x110] sm:$0xff] }
  0x6b   : > { %v904_v3 = vsel %vm807_vm0, %v711_v1, 0.0  ;;  %v913_v6 = vsel %vm807_vm0, %v714_v4, 0.0  ;;  %v910_v7 = vsel %vm807_vm0, %v713_v5, 0.0  ;;  %v716_v8 = vld [vmem:[%s2709_s29 + $0x128] sm:$0xff]  ;;  %v715_v9 = vld [vmem:[%s2709_s29 + $0x120] sm:$0xff]  ;;  %v718_v12 = vld [vmem:[%s2709_s29 + $0x138] sm:$0xff] }
  0x6c   : > { %v919_v10 = vsel %vm807_vm0, %v716_v8, 0.0  ;;  %v916_v11 = vsel %vm807_vm0, %v715_v9, 0.0  ;;  %v717_v13 = vld [vmem:[%s2709_s29 + $0x130] sm:$0xff]  ;;  %v720_v16 = vld [vmem:[%s2709_s29 + $0x148] sm:$0xff]  ;;  %v719_v17 = vld [vmem:[%s2709_s29 + $0x140] sm:$0xff]  ;;  %vm1557_vm15 = vcmask 1048512  }
  0x6d   : > { %830 = vadd.xlane.f32.xlu1 %v829_v14  ;;  %827 = vadd.xlane.f32.xlu0 %v826_v15  ;;  %v925_v14 = vsel %vm807_vm0, %v718_v12, 0.0  ;;  %v922_v15 = vsel %vm807_vm0, %v717_v13, 0.0  ;;  %v722_v20 = vld [vmem:[%s2709_s29 + $0x158] sm:$0xff]  ;;  %v721_v21 = vld [vmem:[%s2709_s29 + $0x150] sm:$0xff]  ;;  %v724_v24 = vld [vmem:[%s2709_s29 + $0x168] sm:$0xff]  ;;  %v1448_v12 = vlaneseq  ;;  %s676_s3 = scalar_lea.vmem [#allocation3], %s2231_s30 }
  0x6e   : > { %v723_v25 = vld [vmem:[%s2709_s29 + $0x160] sm:$0xff]  ;;  %v726_v28 = vld [vmem:[%s2709_s29 + $0x178] sm:$0xff]  ;;  %v725_v29 = vld [vmem:[%s2709_s29 + $0x170] sm:$0xff]  ;;  %s2144_s4 = sshll.u32 %s676_s3, 4  ;;  %s2129_s9 = scalar_lea.sflag [#allocation4], %s2706_s27  ;;  %s3322_s4 = int_to_ptr.vmem [resolvable:$true] %s2144_s4 }
  0x6f   : > { %v728_v32 = vld [vmem:[%s2709_s29 + $0x188] sm:$0xff]  ;;  %v727_v33 = vld [vmem:[%s2709_s29 + $0x180] sm:$0xff]  ;;  %v730_v36 = vld [vmem:[%s2709_s29 + $0x198] sm:$0xff]  ;;  %s2292_s15 = scalar_lea.vmem %s3322_s4, 128  ;;  %s2372_s17 = smov [#allocation3]  }
  0x70   : > { %v729_v37 = vld [vmem:[%s2709_s29 + $0x190] sm:$0xff]  ;;  %v732_v40 = vld [vmem:[%s2709_s29 + $0x1a8] sm:$0xff]  ;;  %v731_v41 = vld [vmem:[%s2709_s29 + $0x1a0] sm:$0xff]  ;;  %p2293_p0 = scmp.ne.s32.totalorder %s3322_s4, %s2292_s15  ;;  %s2296_s20 = sshll.u32 %s2372_s17, 4  ;;  %s2297_s20 = int_to_ptr.vmem [resolvable:$false] %s2296_s20 }
  0x71   : > { %836 = vadd.xlane.f32.xlu1 %v835_v18  ;;  %833 = vadd.xlane.f32.xlu0 %v832_v19  ;;  %v931_v18 = vsel %vm807_vm0, %v720_v16, 0.0  ;;  %v928_v19 = vsel %vm807_vm0, %v719_v17, 0.0  ;;  %v734_v44 = vld [vmem:[%s2709_s29 + $0x1b8] sm:$0xff]  ;;  %v733_v45 = vld [vmem:[%s2709_s29 + $0x1b0] sm:$0xff]  ;;  %v736_v48 = vld [vmem:[%s2709_s29 + $0x1c8] sm:$0xff]  ;;  %v2855_v17 = vand.u32 127, %v1448_v12  ;;  %p2299_p3 = scmp.lt.s32.totalorder %s3322_s4, %s2297_s20 }
  0x72   : > { %v735_v49 = vld [vmem:[%s2709_s29 + $0x1c0] sm:$0xff]  ;;  %v738_v52 = vld [vmem:[%s2709_s29 + $0x1d8] sm:$0xff]  ;;  %v737_v53 = vld [vmem:[%s2709_s29 + $0x1d0] sm:$0xff]  ;;  %p2294_p1 = pnand %p2293_p0, %p2422_p5  ;;  %s2298_s21 = scalar_lea.vmem %s2297_s20, 256 }
  0x73   : > { %v740_v56 = vld [vmem:[%s2709_s29 + $0x1e8] sm:$0xff]  ;;  %v739_v57 = vld [vmem:[%s2709_s29 + $0x1e0] sm:$0xff]  ;;  %v742_v60 = vld [vmem:[%s2709_s29 + $0x1f8] sm:$0xff]  ;;  %p2300_p4 = scmp.lt.s32.totalorder %s2298_s21, %s2292_s15 }
  0x74   : > { %v741_v61 = vld [vmem:[%s2709_s29 + $0x1f0] sm:$0xff]  ;;  %v744_v0 = vld [vmem:[%s2709_s29 + $0x208] sm:$0xff]  ;;  %v743_v1 = vld [vmem:[%s2709_s29 + $0x200] sm:$0xff]  ;;  %p2295_p2 = pneg %p2294_p1 }
  0x75   : > { %842 = vadd.xlane.f32.xlu1 %v841_v22  ;;  %839 = vadd.xlane.f32.xlu0 %v838_v23  ;;  %v937_v22 = vsel %vm807_vm0, %v722_v20, 0.0  ;;  %v934_v23 = vsel %vm807_vm0, %v721_v21, 0.0  ;;  %v746_v4 = vld [vmem:[%s2709_s29 + $0x218] sm:$0xff]  ;;  %v745_v5 = vld [vmem:[%s2709_s29 + $0x210] sm:$0xff]  ;;  %v748_v8 = vld [vmem:[%s2709_s29 + $0x228] sm:$0xff]  ;;  %v2859_v20 = vshrl.u32 %v1448_v12, 7  ;;  %p2301_p6 = por %p2300_p4, %p2299_p3 }
  0x76   : > { %v747_v9 = vld [vmem:[%s2709_s29 + $0x220] sm:$0xff]  ;;  %v750_v13 = vld [vmem:[%s2709_s29 + $0x238] sm:$0xff]  ;;  %v1468_v21 = vadd.s32 4294967272, %v2855_v17 }
  0x77   : > { %p2302_p7 = pnand %p2301_p6, %p2295_p2 }
  0x79   : > { %848 = vadd.xlane.f32.xlu1 %v847_v26  ;;  %845 = vadd.xlane.f32.xlu0 %v844_v27  ;;  %v943_v26 = vsel %vm807_vm0, %v724_v24, 0.0  ;;  %v940_v27 = vsel %vm807_vm0, %v723_v25, 0.0 }
  0x7d   : > { %854 = vadd.xlane.f32.xlu1 %v853_v30  ;;  %851 = vadd.xlane.f32.xlu0 %v850_v31  ;;  %v949_v30 = vsel %vm807_vm0, %v726_v28, 0.0  ;;  %v946_v31 = vsel %vm807_vm0, %v725_v29, 0.0  ;;  %v754_v28 = vld [vmem:[%s2709_s29 + $0x258] sm:$0xff]  ;;  %v753_v29 = vld [vmem:[%s2709_s29 + $0x250] sm:$0xff] }
  0x81   : > { %860 = vadd.xlane.f32.xlu1 %v859_v34  ;;  %857 = vadd.xlane.f32.xlu0 %v856_v35  ;;  %v955_v34 = vsel %vm807_vm0, %v728_v32, 0.0  ;;  %v952_v35 = vsel %vm807_vm0, %v727_v33, 0.0  ;;  %v2872_v32 = vsub.s32 %v2855_v17, %v2859_v20 }
  0x85   : > { %866 = vadd.xlane.f32.xlu1 %v865_v38  ;;  %863 = vadd.xlane.f32.xlu0 %v862_v39  ;;  %v961_v38 = vsel %vm807_vm0, %v730_v36, 0.0  ;;  %v958_v39 = vsel %vm807_vm0, %v729_v37, 0.0 }
  0x89   : > { %872 = vadd.xlane.f32.xlu1 %v871_v42  ;;  %869 = vadd.xlane.f32.xlu0 %v868_v43  ;;  %v967_v42 = vsel %vm807_vm0, %v732_v40, 0.0  ;;  %v964_v43 = vsel %vm807_vm0, %v731_v41, 0.0  ;;  %v1033_v40 = vsel %vm807_vm0, %v754_v28, 0.0  ;;  %v1030_v41 = vsel %vm807_vm0, %v753_v29, 0.0 }
  0x8d   : > { %878 = vadd.xlane.f32.xlu1 %v877_v46  ;;  %875 = vadd.xlane.f32.xlu0 %v874_v47  ;;  %v973_v46 = vsel %vm807_vm0, %v734_v44, 0.0  ;;  %v970_v47 = vsel %vm807_vm0, %v733_v45, 0.0  ;;  %v756_v44 = vld [vmem:[%s2709_s29 + $0x268] sm:$0xff]  ;;  %v755_v45 = vld [vmem:[%s2709_s29 + $0x260] sm:$0xff] }
  0x91   : > { %884 = vadd.xlane.f32.xlu1 %v883_v50  ;;  %881 = vadd.xlane.f32.xlu0 %v880_v51  ;;  %v979_v50 = vsel %vm807_vm0, %v736_v48, 0.0  ;;  %v976_v51 = vsel %vm807_vm0, %v735_v49, 0.0  ;;  %v1496_v48 = vadd.s32 4294967240, %v2855_v17  ;;  %v1489_v49 = vadd.s32 4294967248, %v2855_v17 }
  0x95   : > { %890 = vadd.xlane.f32.xlu1 %v889_v54  ;;  %887 = vadd.xlane.f32.xlu0 %v886_v55  ;;  %v985_v54 = vsel %vm807_vm0, %v738_v52, 0.0  ;;  %v982_v55 = vsel %vm807_vm0, %v737_v53, 0.0 }
  0x99   : > { %896 = vadd.xlane.f32.xlu1 %v895_v58  ;;  %893 = vadd.xlane.f32.xlu0 %v892_v59  ;;  %v991_v58 = vsel %vm807_vm0, %v740_v56, 0.0  ;;  %v988_v59 = vsel %vm807_vm0, %v739_v57, 0.0  ;;  %v1039_v56 = vsel %vm807_vm0, %v756_v44, 0.0  ;;  %v1036_v57 = vsel %vm807_vm0, %v755_v45, 0.0 }
  0x9a   : > { %v1538_v44 = vadd.s32 4294967192, %v2855_v17 }
  0x9d   : > { %902 = vadd.xlane.f32.xlu1 %v901_v62  ;;  %899 = vadd.xlane.f32.xlu0 %v898_v63  ;;  %v997_v62 = vsel %vm807_vm0, %v742_v60, 0.0  ;;  %v994_v63 = vsel %vm807_vm0, %v741_v61, 0.0 }
  0xa1   : > { %908 = vadd.xlane.f32.xlu1 %v907_v2  ;;  %905 = vadd.xlane.f32.xlu0 %v904_v3  ;;  %v1003_v2 = vsel %vm807_vm0, %v744_v0, 0.0  ;;  %v1000_v3 = vsel %vm807_vm0, %v743_v1, 0.0  ;;  %v2906_v0 = vsub.s32 %v1496_v48, %v2859_v20  ;;  %v2909_v1 = vsub.s32 %v1489_v49, %v2859_v20 }
  0xa5   : > { %914 = vadd.xlane.f32.xlu1 %v913_v6  ;;  %911 = vadd.xlane.f32.xlu0 %v910_v7  ;;  %v1009_v6 = vsel %vm807_vm0, %v746_v4, 0.0  ;;  %v1006_v7 = vsel %vm807_vm0, %v745_v5, 0.0 }
  0xa9   : > { %920 = vadd.xlane.f32.xlu1 %v919_v10  ;;  %917 = vadd.xlane.f32.xlu0 %v916_v11  ;;  %v1015_v10 = vsel %vm807_vm0, %v748_v8, 0.0  ;;  %v1012_v11 = vsel %vm807_vm0, %v747_v9, 0.0 }
  0xad   : > { %926 = vadd.xlane.f32.xlu1 %v925_v14  ;;  %923 = vadd.xlane.f32.xlu0 %v922_v15  ;;  %v749_v14 = vld [vmem:[%s2709_s29 + $0x230] sm:$0xff]  ;;  %v1021_v15 = vsel %vm807_vm0, %v750_v13, 0.0 }
  0xae   : > { %v1018_v16 = vsel %vm807_vm0, %v749_v14, 0.0  ;;  %v760_v14 = vld [vmem:[%s2709_s29 + $0x288] sm:$0xff] }
  0xb1   : > { %932 = vadd.xlane.f32.xlu1 %v931_v18  ;;  %929 = vadd.xlane.f32.xlu0 %v928_v19  ;;  %v752_v18 = vld [vmem:[%s2709_s29 + $0x248] sm:$0xff]  ;;  %v751_v19 = vld [vmem:[%s2709_s29 + $0x240] sm:$0xff] }
  0xb5   : > { %938 = vadd.xlane.f32.xlu1 %v937_v22  ;;  %935 = vadd.xlane.f32.xlu0 %v934_v23  ;;  %v1454_v22 = vadd.s32 4294967288, %v2855_v17  ;;  %v1461_v23 = vadd.s32 4294967280, %v2855_v17 }
  0xb7   : > { %v2881_v36 = vsub.s32 %v1461_v23, %v2859_v20 }
  0xb9   : > { %944 = vadd.xlane.f32.xlu1 %v943_v26  ;;  %941 = vadd.xlane.f32.xlu0 %v940_v27  ;;  %v1027_v26 = vsel %vm807_vm0, %v752_v18, 0.0  ;;  %v1024_v27 = vsel %vm807_vm0, %v751_v19, 0.0  ;;  %v1517_v19 = vadd.s32 4294967216, %v2855_v17 }
  0xbd   : > { %950 = vadd.xlane.f32.xlu1 %v949_v30  ;;  %947 = vadd.xlane.f32.xlu0 %v946_v31  ;;  %v1482_v30 = vadd.s32 4294967256, %v2855_v17  ;;  %v1475_v31 = vadd.s32 4294967264, %v2855_v17 }
  0xc1   : > { %956 = vadd.xlane.f32.xlu1 %v955_v34  ;;  %953 = vadd.xlane.f32.xlu0 %v952_v35  ;;  %v2875_v34 = vsub.s32 %v1468_v21, %v2859_v20  ;;  %v2878_v35 = vsub.s32 %v1454_v22, %v2859_v20 }
  0xc5   : > { %962 = vadd.xlane.f32.xlu1 %v961_v38  ;;  %959 = vadd.xlane.f32.xlu0 %v958_v39 }
  0xc9   : > { %968 = vadd.xlane.f32.xlu1 %v967_v42  ;;  %965 = vadd.xlane.f32.xlu0 %v964_v43 }
  0xcd   : > { %974 = vadd.xlane.f32.xlu1 %v973_v46  ;;  %971 = vadd.xlane.f32.xlu0 %v970_v47  ;;  %v2888_v46 = vsub.s32 %v1482_v30, %v2859_v20  ;;  %v2891_v47 = vsub.s32 %v1475_v31, %v2859_v20 }
  0xd1   : > { %980 = vadd.xlane.f32.xlu1 %v979_v50  ;;  %977 = vadd.xlane.f32.xlu0 %v976_v51 }
  0xd5   : > { %986 = vadd.xlane.f32.xlu1 %v985_v54  ;;  %983 = vadd.xlane.f32.xlu0 %v982_v55 }
  0xd9   : > { %992 = vadd.xlane.f32.xlu1 %v991_v58  ;;  %989 = vadd.xlane.f32.xlu0 %v988_v59  ;;  %v758_v58 = vld [vmem:[%s2709_s29 + $0x278] sm:$0xff] }
  0xda   : > { %v1045_v9 = vsel %vm807_vm0, %v758_v58, 0.0  ;;  %v1545_v58 = vadd.s32 4294967184, %v2855_v17 }
  0xdd   : > { %998 = vadd.xlane.f32.xlu1 %v997_v62  ;;  %995 = vadd.xlane.f32.xlu0 %v994_v63  ;;  %v757_v62 = vld [vmem:[%s2709_s29 + $0x270] sm:$0xff] }
  0xe1   : > { %1004 = vadd.xlane.f32.xlu1 %v1003_v2  ;;  %1001 = vadd.xlane.f32.xlu0 %v1000_v3  ;;  %v1510_v2 = vadd.s32 4294967224, %v2855_v17 }
  0xe3   : > { %v2923_v18 = vsub.s32 %v1510_v2, %v2859_v20 }
  0xe5   : > { %1010 = vadd.xlane.f32.xlu1 %v1009_v6  ;;  %1007 = vadd.xlane.f32.xlu0 %v1006_v7  ;;  %v1503_v6 = vadd.s32 4294967232, %v2855_v17 }
  0xe7   : > { %v2929_v23 = vsub.s32 %v1503_v6, %v2859_v20 }
  0xe9   : > { %1016 = vadd.xlane.f32.xlu1 %v1015_v10  ;;  %1013 = vadd.xlane.f32.xlu0 %v1012_v11  ;;  %v1042_v10 = vsel %vm807_vm0, %v757_v62, 0.0  ;;  %v1552_v62 = vadd.s32 4294967176, %v2855_v17 }
  0xed   : > { %1022 = vadd.xlane.f32.xlu1 %v1021_v15  ;;  %1019 = vadd.xlane.f32.xlu0 %v1018_v16  ;;  %v759_v15 = vld [vmem:[%s2709_s29 + $0x280] sm:$0xff] }
  0xee   : > { %v816_v24 = vpop.xlane.xlu1 %815  ;;  %v810_v25 = vpop.xlane.xlu0 %809  ;;  %v1048_v28 = vsel %vm807_vm0, %v759_v15, 0.0 }
  0xef   : > { %v1192_v33 = vmul.f32 0.020408163, %v810_v25  ;;  %v1194_v37 = vmul.f32 0.020408163, %v816_v24  ;;  %v1524_v24 = vadd.s32 4294967208, %v2855_v17 }
  0xf1   : > { %1028 = vadd.xlane.f32.xlu1 %v1027_v26  ;;  %1025 = vadd.xlane.f32.xlu0 %v1024_v27  ;;  %v1453_v50 = vrot.slane %v1192_v33, %v2872_v32  ;;  %v1465_v53 = vrot.slane %v1194_v37, %v2881_v36  ;;  %v1051_v27 = vsel %vm807_vm0, %v760_v14, 0.0  ;;  %v775_v33 = vld [vmem:[%s2709_s29 + $0x300] sm:$0xff]  ;;  %v761_v37 = vld [vmem:[%s2709_s29 + $0x290] sm:$0xff] }
  0xf2   : > { %v819_v38 = vpop.xlane.xlu1 %818  ;;  %v813_v39 = vpop.xlane.xlu0 %812  ;;  %v1096_v49 = vsel %vm807_vm0, %v775_v33, 0.0 }
  0xf3   : > { %v1195_v42 = vmul.f32 0.020408163, %v819_v38  ;;  %v1193_v43 = vmul.f32 0.020408163, %v813_v39  ;;  %v2939_v39 = vsub.s32 %v1517_v19, %v2859_v20 }
  0xf5   : > { %v1472_v51 = vrot.slane %v1195_v42, %v2875_v34  ;;  %v1458_v52 = vrot.slane %v1193_v43, %v2878_v35  ;;  %1034 = vadd.xlane.f32.xlu1 %v1033_v40  ;;  %1031 = vadd.xlane.f32.xlu0 %v1030_v41  ;;  %v1531_v40 = vadd.s32 4294967200, %v2855_v17  ;;  %v2945_v43 = vsub.s32 %v1524_v24, %v2859_v20 }
  0xf6   : > { %v825_v54 = vpop.xlane.xlu1 %824  ;;  %v822_v55 = vpop.xlane.xlu0 %821 }
  0xf7   : > { %v1460_v59 = vsel %vm1459_vm1, %v1458_v52, %v1453_v50  ;;  %v1197_v60 = vmul.f32 0.020408163, %v825_v54  ;;  %v1196_v61 = vmul.f32 0.020408163, %v822_v55  ;;  %v1054_v50 = vsel %vm807_vm0, %v761_v37, 0.0  ;;  %v762_v54 = vld [vmem:[%s2709_s29 + $0x298] sm:$0xff] }
  0xf8   : > { %v1467_v63 = vsel %vm1466_vm2, %v1465_v53, %v1460_v59  ;;  %v776_v55 = vld [vmem:[%s2709_s29 + $0x308] sm:$0xff] }
  0xf9   : > { %v1486_v3 = vrot.slane %v1197_v60, %v2888_v46  ;;  %v1474_v4 = vsel %vm1473_vm3, %v1472_v51, %v1467_v63  ;;  %v1479_v5 = vrot.slane %v1196_v61, %v2891_v47  ;;  %1040 = vadd.xlane.f32.xlu1 %v1039_v56  ;;  %1037 = vadd.xlane.f32.xlu0 %v1036_v57 }
  0xfa   : > { %v831_v7 = vpop.xlane.xlu1 %830  ;;  %v828_v8 = vpop.xlane.xlu0 %827  ;;  %v2955_v57 = vsub.s32 %v1531_v40, %v2859_v20  ;;  %v2961_v61 = vsub.s32 %v1538_v44, %v2859_v20 }
  0xfb   : > { %v1481_v11 = vsel %vm1480_vm4, %v1479_v5, %v1474_v4  ;;  %v1199_v12 = vmul.f32 0.020408163, %v831_v7  ;;  %v1198_v13 = vmul.f32 0.020408163, %v828_v8  ;;  %v1099_v4 = vsel %vm807_vm0, %v776_v55, 0.0  ;;  %v791_v8 = vld [vmem:[%s2709_s29 + $0x380] sm:$0xff] }
  0xfc   : > { %v1488_v16 = vsel %vm1487_vm5, %v1486_v3, %v1481_v11  ;;  %v1057_v3 = vsel %vm807_vm0, %v762_v54, 0.0  ;;  %v2971_v11 = vsub.s32 %v1545_v58, %v2859_v20  ;;  %v764_v58 = vld [vmem:[%s2709_s29 + $0x2a8] sm:$0xff] }
  0xfd   : > { %v1500_v21 = vrot.slane %v1199_v12, %v2906_v0  ;;  %v1493_v22 = vrot.slane %v1198_v13, %v2909_v1  ;;  %1046 = vadd.xlane.f32.xlu1 %v1045_v9  ;;  %1043 = vadd.xlane.f32.xlu0 %v1042_v10  ;;  %v777_v9 = vld [vmem:[%s2709_s29 + $0x310] sm:$0xff]  ;;  %v2976_v13 = vsub.s32 %v1552_v62, %v2859_v20 }
  0xfe   : > { %v837_v25 = vpop.xlane.xlu1 %836  ;;  %v834_v26 = vpop.xlane.xlu0 %833  ;;  %v1102_v19 = vsel %vm807_vm0, %v777_v9, 0.0 }
  0xff   : > { %v1495_v29 = vsel %vm1494_vm6, %v1493_v22, %v1488_v16  ;;  %v1201_v30 = vmul.f32 0.020408163, %v837_v25  ;;  %v1200_v31 = vmul.f32 0.020408163, %v834_v26  ;;  %v1144_v16 = vsel %vm807_vm0, %v791_v8, 0.0  ;;  %v763_v25 = vld [vmem:[%s2709_s29 + $0x2a0] sm:$0xff] }
 0x100   : > { %v1502_v38 = vsel %vm1501_vm7, %v1500_v21, %v1495_v29  ;;  %v792_v26 = vld [vmem:[%s2709_s29 + $0x388] sm:$0xff]  ;;  %v794_v8 = vld [vmem:[%s2709_s29 + $0x398] sm:$0xff] }
 0x101   : > { %v1514_v41 = vrot.slane %v1201_v30, %v2923_v18  ;;  %v1507_v42 = vrot.slane %v1200_v31, %v2929_v23  ;;  %1052 = vadd.xlane.f32.xlu1 %v1051_v27  ;;  %1049 = vadd.xlane.f32.xlu0 %v1048_v28  ;;  %v1060_v31 = vsel %vm807_vm0, %v763_v25, 0.0  ;;  %v1147_v33 = vsel %vm807_vm0, %v792_v26, 0.0  ;;  %v780_v25 = vld [vmem:[%s2709_s29 + $0x328] sm:$0xff] }
 0x102   : > { %v843_v45 = vpop.xlane.xlu1 %842  ;;  %v840_v48 = vpop.xlane.xlu0 %839 }
 0x103   : > { %v1509_v51 = vsel %vm1508_vm8, %v1507_v42, %v1502_v38  ;;  %v1203_v52 = vmul.f32 0.020408163, %v843_v45  ;;  %v1202_v53 = vmul.f32 0.020408163, %v840_v48  ;;  %v778_v42 = vld [vmem:[%s2709_s29 + $0x318] sm:$0xff] }
 0x104   : > { %v1516_v56 = vsel %vm1515_vm9, %v1514_v41, %v1509_v51  ;;  %v793_v41 = vld [vmem:[%s2709_s29 + $0x390] sm:$0xff] }
 0x105   : > { %v1528_v59 = vrot.slane %v1203_v52, %v2945_v43  ;;  %v1521_v60 = vrot.slane %v1202_v53, %v2939_v39  ;;  %1097 = vadd.xlane.f32.xlu1 %v1096_v49  ;;  %1055 = vadd.xlane.f32.xlu0 %v1054_v50  ;;  %v1150_v51 = vsel %vm807_vm0, %v793_v41, 0.0  ;;  %v1105_v52 = vsel %vm807_vm0, %v778_v42, 0.0  ;;  %v766_v41 = vld [vmem:[%s2709_s29 + $0x2b8] sm:$0xff] }
 0x106   : > { %v849_v63 = vpop.xlane.xlu1 %848  ;;  %v846_v2 = vpop.xlane.xlu0 %845 }
 0x107   : > { %v1523_v5 = vsel %vm1522_vm10, %v1521_v60, %v1516_v56  ;;  %v1205_v6 = vmul.f32 0.020408163, %v849_v63  ;;  %v1204_v7 = vmul.f32 0.020408163, %v846_v2  ;;  %v779_v56 = vld [vmem:[%s2709_s29 + $0x320] sm:$0xff] }
 0x108   : > { %v1530_v10 = vsel %vm3370_vm11, %v1528_v59, %v1523_v5  ;;  %v1108_v2 = vsel %vm807_vm0, %v779_v56, 0.0  ;;  %v767_v56 = vld [vmem:[%s2709_s29 + $0x2c0] sm:$0xff] }
 0x109   : > { %v1542_v17 = vrot.slane %v1205_v6, %v2961_v61  ;;  %v1535_v12 = vrot.slane %v1204_v7, %v2955_v57  ;;  %1058 = vadd.xlane.f32.xlu1 %v1057_v3  ;;  %1100 = vadd.xlane.f32.xlu0 %v1099_v4  ;;  %v1063_v3 = vsel %vm807_vm0, %v764_v58, 0.0  ;;  %v765_v7 = vld [vmem:[%s2709_s29 + $0x2b0] sm:$0xff]  ;;  %v796_v58 = vld [vmem:[%s2709_s29 + $0x3a8] sm:$0xff] }
 0x10a   : > { %v855_v14 = vpop.xlane.xlu1 %854  ;;  %v852_v15 = vpop.xlane.xlu0 %851 }
 0x10b   : > { %v1537_v21 = vsel %vm1536_vm12, %v1535_v12, %v1530_v10  ;;  %v1207_v22 = vmul.f32 0.020408163, %v855_v14  ;;  %v1206_v24 = vmul.f32 0.020408163, %v852_v15  ;;  %v1066_v15 = vsel %vm807_vm0, %v765_v7, 0.0 }
 0x10c   : > { %v1544_v27 = vsel %vm1543_vm13, %v1542_v17, %v1537_v21 }
 0x10d   : > { %v1556_v20 = vrot.slane %v1207_v22, %v2976_v13  ;;  %v1549_v28 = vrot.slane %v1206_v24, %v2971_v11  ;;  %1145 = vadd.xlane.f32.xlu1 %v1144_v16  ;;  %1103 = vadd.xlane.f32.xlu0 %v1102_v19  ;;  %v1153_v16 = vsel %vm807_vm0, %v794_v8, 0.0  ;;  %v795_v24 = vld [vmem:[%s2709_s29 + $0x3a0] sm:$0xff]  ;;  %v797_v8 = vld [vmem:[%s2709_s29 + $0x3b0] sm:$0xff] }
 0x10e   : > { %v861_v29 = vpop.xlane.xlu1 %860  ;;  %v858_v30 = vpop.xlane.xlu0 %857 }
 0x10f   : > { %v1551_v37 = vsel %vm1550_vm14, %v1549_v28, %v1544_v27  ;;  %v1209_v38 = vmul.f32 0.020408163, %v861_v29  ;;  %v1208_v40 = vmul.f32 0.020408163, %v858_v30  ;;  %v1156_v30 = vsel %vm807_vm0, %v795_v24, 0.0 }
 0x110   : > { %v2992_v44 = vsel %vm1557_vm15, %v1556_v20, %v1551_v37 }
 0x111   : > { %v1566_v45 = vrot.slane %v1209_v38, %v2878_v35  ;;  %v1562_v48 = vrot.slane %v1208_v40, %v2872_v32  ;;  %1061 = vadd.xlane.f32.xlu1 %v1060_v31  ;;  %1148 = vadd.xlane.f32.xlu0 %v1147_v33  ;;  %v1111_v31 = vsel %vm807_vm0, %v780_v25, 0.0  ;;  %v781_v40 = vld [vmem:[%s2709_s29 + $0x330] sm:$0xff]  ;;  %v783_v25 = vld [vmem:[%s2709_s29 + $0x340] sm:$0xff] }
 0x112   : > { %v867_v49 = vpop.xlane.xlu1 %866  ;;  %v864_v50 = vpop.xlane.xlu0 %863 }
 0x113   : > { %v1567_v53 = vsel %vm1459_vm1, %v1566_v45, %v1562_v48  ;;  %v1211_v54 = vmul.f32 0.020408163, %v867_v49  ;;  %v1210_v55 = vmul.f32 0.020408163, %v864_v50 }
 0x115   : > { %v1576_v59 = vrot.slane %v1211_v54, %v2875_v34  ;;  %v1571_v60 = vrot.slane %v1210_v55, %v2881_v36  ;;  %1151 = vadd.xlane.f32.xlu1 %v1150_v51  ;;  %1106 = vadd.xlane.f32.xlu0 %v1105_v52  ;;  %v1114_v51 = vsel %vm807_vm0, %v781_v40, 0.0  ;;  %v1069_v52 = vsel %vm807_vm0, %v766_v41, 0.0  ;;  %v769_v41 = vld [vmem:[%s2709_s29 + $0x2d0] sm:$0xff] }
 0x116   : > { %v873_v62 = vpop.xlane.xlu1 %872  ;;  %v870_v63 = vpop.xlane.xlu0 %869 }
 0x117   : > { %v1572_v4 = vsel %vm1466_vm2, %v1571_v60, %v1567_v53  ;;  %v1213_v5 = vmul.f32 0.020408163, %v873_v62  ;;  %v1212_v6 = vmul.f32 0.020408163, %v870_v63 }
 0x118   : > { %v1577_v9 = vsel %vm1473_vm3, %v1576_v59, %v1572_v4  ;;  %v1159_v4 = vsel %vm807_vm0, %v796_v58, 0.0 }
 0x119   : > { %v1586_v10 = vrot.slane %v1213_v5, %v2888_v46  ;;  %v1581_v17 = vrot.slane %v1212_v6, %v2891_v47  ;;  %1109 = vadd.xlane.f32.xlu1 %v1108_v2  ;;  %1064 = vadd.xlane.f32.xlu0 %v1063_v3  ;;  %v1072_v3 = vsel %vm807_vm0, %v767_v56, 0.0 }
 0x11a   : > { %v879_v12 = vpop.xlane.xlu1 %878  ;;  %v876_v14 = vpop.xlane.xlu0 %875 }
 0x11b   : > { %v1582_v19 = vsel %vm1480_vm4, %v1581_v17, %v1577_v9  ;;  %v1215_v21 = vmul.f32 0.020408163, %v879_v12  ;;  %v1214_v22 = vmul.f32 0.020408163, %v876_v14  ;;  %v782_v9 = vld [vmem:[%s2709_s29 + $0x338] sm:$0xff] }
 0x11c   : > { %v1587_v26 = vsel %vm1487_vm5, %v1586_v10, %v1582_v19  ;;  %v1117_v19 = vsel %vm807_vm0, %v782_v9, 0.0  ;;  %v770_v9 = vld [vmem:[%s2709_s29 + $0x2d8] sm:$0xff] }
 0x11d   : > { %v1596_v27 = vrot.slane %v1215_v21, %v2906_v0  ;;  %v1591_v20 = vrot.slane %v1214_v22, %v2909_v1  ;;  %1067 = vadd.xlane.f32.xlu1 %v1066_v15  ;;  %1154 = vadd.xlane.f32.xlu0 %v1153_v16  ;;  %v1162_v16 = vsel %vm807_vm0, %v797_v8, 0.0  ;;  %v785_v8 = vld [vmem:[%s2709_s29 + $0x350] sm:$0xff] }
 0x11e   : > { %v885_v28 = vpop.xlane.xlu1 %884  ;;  %v882_v29 = vpop.xlane.xlu0 %881 }
 0x11f   : > { %v1592_v33 = vsel %vm1494_vm6, %v1591_v20, %v1587_v26  ;;  %v1217_v37 = vmul.f32 0.020408163, %v885_v28  ;;  %v1216_v38 = vmul.f32 0.020408163, %v882_v29  ;;  %v768_v26 = vld [vmem:[%s2709_s29 + $0x2c8] sm:$0xff] }
 0x120   : > { %v1597_v42 = vsel %vm1501_vm7, %v1596_v27, %v1592_v33  ;;  %v1075_v33 = vsel %vm807_vm0, %v768_v26, 0.0  ;;  %v800_v26 = vld [vmem:[%s2709_s29 + $0x3c8] sm:$0xff] }
 0x121   : > { %v1606_v45 = vrot.slane %v1217_v37, %v2923_v18  ;;  %v1601_v48 = vrot.slane %v1216_v38, %v2929_v23  ;;  %1157 = vadd.xlane.f32.xlu1 %v1156_v30  ;;  %1112 = vadd.xlane.f32.xlu0 %v1111_v31  ;;  %v1120_v31 = vsel %vm807_vm0, %v783_v25, 0.0  ;;  %v771_v25 = vld [vmem:[%s2709_s29 + $0x2e0] sm:$0xff] }
 0x122   : > { %v891_v49 = vpop.xlane.xlu1 %890  ;;  %v888_v50 = vpop.xlane.xlu0 %887 }
 0x123   : > { %v1602_v53 = vsel %vm1508_vm8, %v1601_v48, %v1597_v42  ;;  %v1219_v54 = vmul.f32 0.020408163, %v891_v49  ;;  %v1218_v55 = vmul.f32 0.020408163, %v888_v50  ;;  %v798_v42 = vld [vmem:[%s2709_s29 + $0x3b8] sm:$0xff] }
 0x124   : > { %v1607_v59 = vsel %vm1515_vm9, %v1606_v45, %v1602_v53  ;;  %v1078_v53 = vsel %vm807_vm0, %v769_v41, 0.0  ;;  %v801_v41 = vld [vmem:[%s2709_s29 + $0x3d0] sm:$0xff] }
 0x125   : > { %v1616_v60 = vrot.slane %v1219_v54, %v2945_v43  ;;  %v1611_v62 = vrot.slane %v1218_v55, %v2939_v39  ;;  %1115 = vadd.xlane.f32.xlu1 %v1114_v51  ;;  %1070 = vadd.xlane.f32.xlu0 %v1069_v52  ;;  %v1165_v54 = vsel %vm807_vm0, %v798_v42, 0.0  ;;  %v786_v42 = vld [vmem:[%s2709_s29 + $0x358] sm:$0xff] }
 0x126   : > { %v897_v63 = vpop.xlane.xlu1 %896  ;;  %v894_v2 = vpop.xlane.xlu0 %893 }
 0x127   : > { %v1612_v5 = vsel %vm1522_vm10, %v1611_v62, %v1607_v59  ;;  %v1221_v6 = vmul.f32 0.020408163, %v897_v63  ;;  %v1220_v7 = vmul.f32 0.020408163, %v894_v2  ;;  %v784_v59 = vld [vmem:[%s2709_s29 + $0x348] sm:$0xff] }
 0x128   : > { %v1617_v10 = vsel %vm3370_vm11, %v1616_v60, %v1612_v5  ;;  %vm2112_vm11 = vcmask 1041409  }
 0x129   : > { %v1626_v17 = vrot.slane %v1221_v6, %v2961_v61  ;;  %v1621_v12 = vrot.slane %v1220_v7, %v2955_v57  ;;  %1073 = vadd.xlane.f32.xlu1 %v1072_v3  ;;  %1160 = vadd.xlane.f32.xlu0 %v1159_v4  ;;  %v1123_v4 = vsel %vm807_vm0, %v784_v59, 0.0  ;;  %v772_v59 = vld [vmem:[%s2709_s29 + $0x2e8] sm:$0xff] }
 0x12a   : > { %v903_v14 = vpop.xlane.xlu1 %902  ;;  %v900_v15 = vpop.xlane.xlu0 %899 }
 0x12b   : > { %v1622_v21 = vsel %vm1536_vm12, %v1621_v12, %v1617_v10  ;;  %v1223_v22 = vmul.f32 0.020408163, %v903_v14  ;;  %v1222_v24 = vmul.f32 0.020408163, %v900_v15 }
 0x12c   : > { %v1627_v27 = vsel %vm1543_vm13, %v1626_v17, %v1622_v21 }
 0x12d   : > { %v1636_v20 = vrot.slane %v1223_v22, %v2976_v13  ;;  %v1631_v28 = vrot.slane %v1222_v24, %v2971_v11  ;;  %1163 = vadd.xlane.f32.xlu1 %v1162_v16  ;;  %1118 = vadd.xlane.f32.xlu0 %v1117_v19  ;;  %v1126_v16 = vsel %vm807_vm0, %v785_v8, 0.0  ;;  %v1081_v19 = vsel %vm807_vm0, %v770_v9, 0.0  ;;  %v773_v9 = vld [vmem:[%s2709_s29 + $0x2f0] sm:$0xff] }
 0x12e   : > { %v909_v29 = vpop.xlane.xlu1 %908  ;;  %v906_v30 = vpop.xlane.xlu0 %905 }
 0x12f   : > { %v1632_v37 = vsel %vm1550_vm14, %v1631_v28, %v1627_v27  ;;  %v1225_v38 = vmul.f32 0.020408163, %v909_v29  ;;  %v1224_v40 = vmul.f32 0.020408163, %v906_v30 }
 0x130   : > { %v1637_v45 = vsel %vm1557_vm15, %v1636_v20, %v1632_v37 }
 0x131   : > { %v3058_v48 = vsel %vm2112_vm11, %v1637_v45, %v2992_v44  ;;  %v1645_v49 = vrot.slane %v1225_v38, %v2878_v35  ;;  %v1641_v50 = vrot.slane %v1224_v40, %v2872_v32  ;;  %1121 = vadd.xlane.f32.xlu1 %v1120_v31  ;;  %1076 = vadd.xlane.f32.xlu0 %v1075_v33  ;;  %v799_v44 = vld [vmem:[%s2709_s29 + $0x3c0] sm:$0xff]  ;;  %v1084_v31 = vsel %vm807_vm0, %v771_v25, 0.0 }
 0x132   : > { %v915_v51 = vpop.xlane.xlu1 %914  ;;  %v912_v52 = vpop.xlane.xlu0 %911  ;;  %v1168_v3 = vsel %vm807_vm0, %v799_v44, 0.0  ;;  %v1171_v33 = vsel %vm807_vm0, %v800_v26, 0.0  ;;  %v787_v44 = vld [vmem:[%s2709_s29 + $0x360] sm:$0xff]  ;;  %vm3373_vm11 = vcmask 786112  }
 0x133   : > { %v1646_v55 = vsel %vm1459_vm1, %v1645_v49, %v1641_v50  ;;  %v1227_v56 = vmul.f32 0.020408163, %v915_v51  ;;  %v1226_v58 = vmul.f32 0.020408163, %v912_v52  ;;  %v803_v26 = vld [vmem:[%s2709_s29 + $0x3e0] sm:$0xff] }
 0x135   : > { %v1655_v60 = vrot.slane %v1227_v56, %v2875_v34  ;;  %v1650_v62 = vrot.slane %v1226_v58, %v2881_v36  ;;  %1079 = vadd.xlane.f32.xlu1 %v1078_v53  ;;  %1166 = vadd.xlane.f32.xlu0 %v1165_v54  ;;  %v1174_v53 = vsel %vm807_vm0, %v801_v41, 0.0  ;;  %v1129_v54 = vsel %vm807_vm0, %v786_v42, 0.0  ;;  %v789_v42 = vld [vmem:[%s2709_s29 + $0x370] sm:$0xff] }
 0x136   : > { %v921_v63 = vpop.xlane.xlu1 %920  ;;  %v918_v2 = vpop.xlane.xlu0 %917 }
 0x137   : > { %v1651_v5 = vsel %vm1466_vm2, %v1650_v62, %v1646_v55  ;;  %v1229_v6 = vmul.f32 0.020408163, %v921_v63  ;;  %v1228_v7 = vmul.f32 0.020408163, %v918_v2 }
 0x138   : > { %v1656_v10 = vsel %vm1473_vm3, %v1655_v60, %v1651_v5  ;;  %v1087_v5 = vsel %vm807_vm0, %v772_v59, 0.0 }
 0x139   : > { %v1665_v17 = vrot.slane %v1229_v6, %v2888_v46  ;;  %v1660_v12 = vrot.slane %v1228_v7, %v2891_v47  ;;  %1169 = vadd.xlane.f32.xlu1 %v1168_v3  ;;  %1124 = vadd.xlane.f32.xlu0 %v1123_v4  ;;  %v1132_v4 = vsel %vm807_vm0, %v787_v44, 0.0 }
 0x13a   : > { %v927_v14 = vpop.xlane.xlu1 %926  ;;  %v924_v15 = vpop.xlane.xlu0 %923 }
 0x13b   : > { %v1661_v21 = vsel %vm1480_vm4, %v1660_v12, %v1656_v10  ;;  %v1231_v22 = vmul.f32 0.020408163, %v927_v14  ;;  %v1230_v24 = vmul.f32 0.020408163, %v924_v15  ;;  %v802_v10 = vld [vmem:[%s2709_s29 + $0x3d8] sm:$0xff] }
 0x13c   : > { %v1666_v27 = vsel %vm1487_vm5, %v1665_v17, %v1661_v21  ;;  %v1177_v21 = vsel %vm807_vm0, %v802_v10, 0.0  ;;  %v806_v10 = vld [vmem:[%s2709_s29 + $0x3f8] sm:$0xff] }
 0x13d   : > { %v1675_v20 = vrot.slane %v1231_v22, %v2906_v0  ;;  %v1670_v28 = vrot.slane %v1230_v24, %v2909_v1  ;;  %1127 = vadd.xlane.f32.xlu1 %v1126_v16  ;;  %1082 = vadd.xlane.f32.xlu0 %v1081_v19  ;;  %v1090_v19 = vsel %vm807_vm0, %v773_v9, 0.0  ;;  %v805_v9 = vld [vmem:[%s2709_s29 + $0x3f0] sm:$0xff] }
 0x13e   : > { %v933_v29 = vpop.xlane.xlu1 %932  ;;  %v930_v30 = vpop.xlane.xlu0 %929 }
 0x13f   : > { %v1671_v37 = vsel %vm1494_vm6, %v1670_v28, %v1666_v27  ;;  %v1233_v38 = vmul.f32 0.020408163, %v933_v29  ;;  %v1232_v40 = vmul.f32 0.020408163, %v930_v30  ;;  %v788_v27 = vld [vmem:[%s2709_s29 + $0x368] sm:$0xff] }
 0x140   : > { %v1676_v45 = vsel %vm1501_vm7, %v1675_v20, %v1671_v37  ;;  %v1135_v37 = vsel %vm807_vm0, %v788_v27, 0.0 }
 0x141   : > { %v1685_v49 = vrot.slane %v1233_v38, %v2923_v18  ;;  %v1680_v50 = vrot.slane %v1232_v40, %v2929_v23  ;;  %1085 = vadd.xlane.f32.xlu1 %v1084_v31  ;;  %1172 = vadd.xlane.f32.xlu0 %v1171_v33  ;;  %v1180_v33 = vsel %vm807_vm0, %v803_v26, 0.0 }
 0x142   : > { %v939_v51 = vpop.xlane.xlu1 %938  ;;  %v936_v52 = vpop.xlane.xlu0 %935 }
 0x143   : > { %v1681_v55 = vsel %vm1508_vm8, %v1680_v50, %v1676_v45  ;;  %v1235_v56 = vmul.f32 0.020408163, %v939_v51  ;;  %v1234_v58 = vmul.f32 0.020408163, %v936_v52  ;;  %v774_v45 = vld [vmem:[%s2709_s29 + $0x2f8] sm:$0xff] }
 0x144   : > { %v1686_v60 = vsel %vm1515_vm9, %v1685_v49, %v1681_v55  ;;  %v1138_v55 = vsel %vm807_vm0, %v789_v42, 0.0 }
 0x145   : > { %v1695_v62 = vrot.slane %v1235_v56, %v2945_v43  ;;  %v1690_v63 = vrot.slane %v1234_v58, %v2939_v39  ;;  %1175 = vadd.xlane.f32.xlu1 %v1174_v53  ;;  %1130 = vadd.xlane.f32.xlu0 %v1129_v54  ;;  %v1093_v56 = vsel %vm807_vm0, %v774_v45, 0.0 }
 0x146   : > { %v945_v2 = vpop.xlane.xlu1 %944  ;;  %v942_v3 = vpop.xlane.xlu0 %941 }
 0x147   : > { %v1691_v6 = vsel %vm1522_vm10, %v1690_v63, %v1686_v60  ;;  %v1237_v7 = vmul.f32 0.020408163, %v945_v2  ;;  %v1236_v8 = vmul.f32 0.020408163, %v942_v3  ;;  %v804_v60 = vld [vmem:[%s2709_s29 + $0x3e8] sm:$0xff] }
 0x148   : > { %v1696_v17 = vsel %vm3373_vm11, %v1695_v62, %v1691_v6  ;;  %vm2114_vm11 = vcmask 1042434  }
 0x149   : > { %v1705_v12 = vrot.slane %v1237_v7, %v2961_v61  ;;  %v1700_v14 = vrot.slane %v1236_v8, %v2955_v57  ;;  %1133 = vadd.xlane.f32.xlu1 %v1132_v4  ;;  %1088 = vadd.xlane.f32.xlu0 %v1087_v5  ;;  %v1183_v5 = vsel %vm807_vm0, %v804_v60, 0.0 }
 0x14a   : > { %v951_v15 = vpop.xlane.xlu1 %950  ;;  %v948_v16 = vpop.xlane.xlu0 %947 }
 0x14b   : > { %v1701_v22 = vsel %vm1536_vm12, %v1700_v14, %v1696_v17  ;;  %v1239_v24 = vmul.f32 0.020408163, %v951_v15  ;;  %v1238_v25 = vmul.f32 0.020408163, %v948_v16 }
 0x14c   : > { %v1706_v20 = vsel %vm1543_vm13, %v1705_v12, %v1701_v22 }
 0x14d   : > { %v1715_v28 = vrot.slane %v1239_v24, %v2976_v13  ;;  %v1710_v29 = vrot.slane %v1238_v25, %v2971_v11  ;;  %1091 = vadd.xlane.f32.xlu1 %v1090_v19  ;;  %1178 = vadd.xlane.f32.xlu0 %v1177_v21  ;;  %v1186_v19 = vsel %vm807_vm0, %v805_v9, 0.0  ;;  %v1189_v21 = vsel %vm807_vm0, %v806_v10, 0.0 }
 0x14e   : > { %v957_v30 = vpop.xlane.xlu1 %956  ;;  %v954_v31 = vpop.xlane.xlu0 %953 }
 0x14f   : > { %v1711_v38 = vsel %vm1550_vm14, %v1710_v29, %v1706_v20  ;;  %v1241_v40 = vmul.f32 0.020408163, %v957_v30  ;;  %v1240_v41 = vmul.f32 0.020408163, %v954_v31 }
 0x150   : > { %v1716_v49 = vsel %vm1557_vm15, %v1715_v28, %v1711_v38 }
 0x151   : > { %v3124_v50 = vsel %vm2114_vm11, %v1716_v49, %v3058_v48  ;;  %v1724_v51 = vrot.slane %v1241_v40, %v2878_v35  ;;  %v1720_v52 = vrot.slane %v1240_v41, %v2872_v32  ;;  %1181 = vadd.xlane.f32.xlu1 %v1180_v33  ;;  %1136 = vadd.xlane.f32.xlu0 %v1135_v37  ;;  %v790_v48 = vld [vmem:[%s2709_s29 + $0x378] sm:$0xff]  ;;  %vm2116_vm11 = vcmask 1043459  }
 0x152   : > { %v963_v53 = vpop.xlane.xlu1 %962  ;;  %v960_v54 = vpop.xlane.xlu0 %959  ;;  %v1141_v4 = vsel %vm807_vm0, %v790_v48, 0.0  ;;  %vm3374_vm0 = vcmask 786112  }
 0x153   : > { %v1725_v58 = vsel %vm1459_vm1, %v1724_v51, %v1720_v52  ;;  %v1243_v44 = vmul.f32 0.020408163, %v963_v53  ;;  %v1242_v59 = vmul.f32 0.020408163, %v960_v54 }
 0x155   : > { %v1734_v62 = vrot.slane %v1243_v44, %v2875_v34  ;;  %v1729_v63 = vrot.slane %v1242_v59, %v2881_v36  ;;  %1139 = vadd.xlane.f32.xlu1 %v1138_v55  ;;  %1094 = vadd.xlane.f32.xlu0 %v1093_v56 }
 0x156   : > { %v969_v2 = vpop.xlane.xlu1 %968  ;;  %v966_v3 = vpop.xlane.xlu0 %965 }
 0x157   : > { %v1730_v6 = vsel %vm1466_vm2, %v1729_v63, %v1725_v58  ;;  %v1245_v7 = vmul.f32 0.020408163, %v969_v2  ;;  %v1244_v8 = vmul.f32 0.020408163, %v966_v3 }
 0x158   : > { %v1735_v17 = vsel %vm1473_vm3, %v1734_v62, %v1730_v6 }
 0x159   : > { %v1744_v12 = vrot.slane %v1245_v7, %v2888_v46  ;;  %v1739_v14 = vrot.slane %v1244_v8, %v2891_v47  ;;  %1142 = vadd.xlane.f32.xlu1 %v1141_v4  ;;  %1184 = vadd.xlane.f32.xlu0 %v1183_v5 }
 0x15a   : > { %v975_v15 = vpop.xlane.xlu1 %974  ;;  %v972_v16 = vpop.xlane.xlu0 %971 }
 0x15b   : > { %v1740_v22 = vsel %vm1480_vm4, %v1739_v14, %v1735_v17  ;;  %v1247_v24 = vmul.f32 0.020408163, %v975_v15  ;;  %v1246_v25 = vmul.f32 0.020408163, %v972_v16 }
 0x15c   : > { %v1745_v26 = vsel %vm1487_vm5, %v1744_v12, %v1740_v22 }
 0x15d   : > { %v1754_v27 = vrot.slane %v1247_v24, %v2906_v0  ;;  %v1749_v20 = vrot.slane %v1246_v25, %v2909_v1  ;;  %1187 = vadd.xlane.f32.xlu0 %v1186_v19  ;;  %1190 = vadd.xlane.f32.xlu1 %v1189_v21 }
 0x15e   : > { %v981_v28 = vpop.xlane.xlu1 %980  ;;  %v978_v29 = vpop.xlane.xlu0 %977 }
 0x15f   : > { %v1750_v30 = vsel %vm1494_vm6, %v1749_v20, %v1745_v26  ;;  %v1249_v31 = vmul.f32 0.020408163, %v981_v28  ;;  %v1248_v33 = vmul.f32 0.020408163, %v978_v29 }
 0x160   : > { %v1755_v37 = vsel %vm1501_vm7, %v1754_v27, %v1750_v30 }
 0x161   : > { %v1764_v38 = vrot.slane %v1249_v31, %v2923_v18  ;;  %v1759_v40 = vrot.slane %v1248_v33, %v2929_v23 }
 0x162   : > { %v987_v41 = vpop.xlane.xlu1 %986  ;;  %v984_v42 = vpop.xlane.xlu0 %983 }
 0x163   : > { %v1760_v45 = vsel %vm1508_vm8, %v1759_v40, %v1755_v37  ;;  %v1251_v49 = vmul.f32 0.020408163, %v987_v41  ;;  %v1250_v51 = vmul.f32 0.020408163, %v984_v42 }
 0x164   : > { %v1765_v52 = vsel %vm1515_vm9, %v1764_v38, %v1760_v45 }
 0x165   : > { %v1774_v53 = vrot.slane %v1251_v49, %v2945_v43  ;;  %v1769_v54 = vrot.slane %v1250_v51, %v2939_v39 }
 0x166   : > { %v993_v55 = vpop.xlane.xlu1 %992  ;;  %v990_v56 = vpop.xlane.xlu0 %989 }
 0x167   : > { %v1770_v58 = vsel %vm1522_vm10, %v1769_v54, %v1765_v52  ;;  %v1253_v44 = vmul.f32 0.020408163, %v993_v55  ;;  %v1252_v59 = vmul.f32 0.020408163, %v990_v56 }
 0x168   : > { %v1775_v48 = vsel %vm3374_vm0, %v1774_v53, %v1770_v58 }
 0x169   : > { %v1784_v60 = vrot.slane %v1253_v44, %v2961_v61  ;;  %v1779_v62 = vrot.slane %v1252_v59, %v2955_v57 }
 0x16a   : > { %v999_v63 = vpop.xlane.xlu1 %998  ;;  %v996_v2 = vpop.xlane.xlu0 %995 }
 0x16b   : > { %v1780_v3 = vsel %vm1536_vm12, %v1779_v62, %v1775_v48  ;;  %v1255_v4 = vmul.f32 0.020408163, %v999_v63  ;;  %v1254_v5 = vmul.f32 0.020408163, %v996_v2 }
 0x16c   : > { %v1785_v6 = vsel %vm1543_vm13, %v1784_v60, %v1780_v3 }
 0x16d   : > { %v1794_v7 = vrot.slane %v1255_v4, %v2976_v13  ;;  %v1789_v8 = vrot.slane %v1254_v5, %v2971_v11 }
 0x16e   : > { %v1005_v9 = vpop.xlane.xlu1 %1004  ;;  %v1002_v10 = vpop.xlane.xlu0 %1001 }
 0x16f   : > { %v1790_v17 = vsel %vm1550_vm14, %v1789_v8, %v1785_v6  ;;  %v1257_v12 = vmul.f32 0.020408163, %v1005_v9  ;;  %v1256_v14 = vmul.f32 0.020408163, %v1002_v10 }
 0x170   : > { %v1795_v15 = vsel %vm1557_vm15, %v1794_v7, %v1790_v17 }
 0x171   : > { %v3168_v16 = vsel %vm2116_vm11, %v1795_v15, %v3124_v50  ;;  %v1803_v19 = vrot.slane %v1257_v12, %v2878_v35  ;;  %v1799_v21 = vrot.slane %v1256_v14, %v2872_v32  ;;  %vm2118_vm11 = vcmask 1044484  }
 0x172   : > { %v1011_v22 = vpop.xlane.xlu1 %1010  ;;  %v1008_v24 = vpop.xlane.xlu0 %1007 }
 0x173   : > { %v1804_v25 = vsel %vm1459_vm1, %v1803_v19, %v1799_v21  ;;  %v1259_v26 = vmul.f32 0.020408163, %v1011_v22  ;;  %v1258_v27 = vmul.f32 0.020408163, %v1008_v24 }
 0x175   : > { %v1813_v20 = vrot.slane %v1259_v26, %v2875_v34  ;;  %v1808_v28 = vrot.slane %v1258_v27, %v2881_v36 }
 0x176   : > { %v1017_v29 = vpop.xlane.xlu1 %1016  ;;  %v1014_v30 = vpop.xlane.xlu0 %1013 }
 0x177   : > { %v1809_v31 = vsel %vm1466_vm2, %v1808_v28, %v1804_v25  ;;  %v1261_v50 = vmul.f32 0.020408163, %v1017_v29  ;;  %v1260_v33 = vmul.f32 0.020408163, %v1014_v30 }
 0x178   : > { %v1814_v37 = vsel %vm1473_vm3, %v1813_v20, %v1809_v31 }
 0x179   : > { %v1823_v38 = vrot.slane %v1261_v50, %v2888_v46  ;;  %v1818_v40 = vrot.slane %v1260_v33, %v2891_v47 }
 0x17a   : > { %v1023_v41 = vpop.xlane.xlu1 %1022  ;;  %v1020_v42 = vpop.xlane.xlu0 %1019 }
 0x17b   : > { %v1819_v45 = vsel %vm1480_vm4, %v1818_v40, %v1814_v37  ;;  %v1263_v49 = vmul.f32 0.020408163, %v1023_v41  ;;  %v1262_v51 = vmul.f32 0.020408163, %v1020_v42 }
 0x17c   : > { %v1824_v52 = vsel %vm1487_vm5, %v1823_v38, %v1819_v45 }
 0x17d   : > { %v1833_v53 = vrot.slane %v1263_v49, %v2906_v0  ;;  %v1828_v54 = vrot.slane %v1262_v51, %v2909_v1 }
 0x17e   : > { %v1029_v55 = vpop.xlane.xlu1 %1028  ;;  %v1026_v56 = vpop.xlane.xlu0 %1025 }
 0x17f   : > { %v1829_v58 = vsel %vm1494_vm6, %v1828_v54, %v1824_v52  ;;  %v1265_v44 = vmul.f32 0.020408163, %v1029_v55  ;;  %v1264_v59 = vmul.f32 0.020408163, %v1026_v56 }
 0x180   : > { %v1834_v48 = vsel %vm1501_vm7, %v1833_v53, %v1829_v58 }
 0x181   : > { %v1843_v60 = vrot.slane %v1265_v44, %v2923_v18  ;;  %v1838_v62 = vrot.slane %v1264_v59, %v2929_v23 }
 0x182   : > { %v1035_v63 = vpop.xlane.xlu1 %1034  ;;  %v1032_v2 = vpop.xlane.xlu0 %1031 }
 0x183   : > { %v1839_v3 = vsel %vm1508_vm8, %v1838_v62, %v1834_v48  ;;  %v1267_v4 = vmul.f32 0.020408163, %v1035_v63  ;;  %v1266_v5 = vmul.f32 0.020408163, %v1032_v2 }
 0x184   : > { %v1844_v6 = vsel %vm1515_vm9, %v1843_v60, %v1839_v3 }
 0x185   : > { %v1853_v7 = vrot.slane %v1267_v4, %v2945_v43  ;;  %v1848_v8 = vrot.slane %v1266_v5, %v2939_v39 }
 0x186   : > { %v1041_v9 = vpop.xlane.xlu1 %1040  ;;  %v1038_v10 = vpop.xlane.xlu0 %1037 }
 0x187   : > { %v1849_v17 = vsel %vm1522_vm10, %v1848_v8, %v1844_v6  ;;  %v1269_v12 = vmul.f32 0.020408163, %v1041_v9  ;;  %v1268_v14 = vmul.f32 0.020408163, %v1038_v10 }
 0x188   : > { %v1854_v15 = vsel %vm3374_vm0, %v1853_v7, %v1849_v17 }
 0x189   : > { %v1863_v19 = vrot.slane %v1269_v12, %v2961_v61  ;;  %v1858_v21 = vrot.slane %v1268_v14, %v2955_v57 }
 0x18a   : > { %v1047_v22 = vpop.xlane.xlu1 %1046  ;;  %v1044_v24 = vpop.xlane.xlu0 %1043 }
 0x18b   : > { %v1859_v25 = vsel %vm1536_vm12, %v1858_v21, %v1854_v15  ;;  %v1271_v26 = vmul.f32 0.020408163, %v1047_v22  ;;  %v1270_v27 = vmul.f32 0.020408163, %v1044_v24 }
 0x18c   : > { %v1864_v20 = vsel %vm1543_vm13, %v1863_v19, %v1859_v25 }
 0x18d   : > { %v1873_v28 = vrot.slane %v1271_v26, %v2976_v13  ;;  %v1868_v29 = vrot.slane %v1270_v27, %v2971_v11 }
 0x18e   : > { %v1053_v30 = vpop.xlane.xlu1 %1052  ;;  %v1050_v31 = vpop.xlane.xlu0 %1049 }
 0x18f   : > { %v1869_v50 = vsel %vm1550_vm14, %v1868_v29, %v1864_v20  ;;  %v1273_v33 = vmul.f32 0.020408163, %v1053_v30  ;;  %v1272_v37 = vmul.f32 0.020408163, %v1050_v31 }
 0x190   : > { %v1874_v38 = vsel %vm1557_vm15, %v1873_v28, %v1869_v50 }
 0x191   : > { %v1882_v40 = vrot.slane %v1273_v33, %v2878_v35  ;;  %v1878_v41 = vrot.slane %v1272_v37, %v2872_v32  ;;  %v3204_v42 = vsel %vm2118_vm11, %v1874_v38, %v3168_v16 }
 0x192   : > { %v1098_v45 = vpop.xlane.xlu1 %1097  ;;  %v1056_v49 = vpop.xlane.xlu0 %1055 }
 0x193   : > { %v1883_v51 = vsel %vm1459_vm1, %v1882_v40, %v1878_v41  ;;  %v1274_v52 = vmul.f32 0.020408163, %v1056_v49  ;;  %v1288_v53 = vmul.f32 0.020408163, %v1098_v45 }
 0x195   : > { %v1887_v54 = vrot.slane %v1274_v52, %v2881_v36  ;;  %v1957_v48 = vrot.slane %v1288_v53, %v2872_v32 }
 0x196   : > { %v1059_v55 = vpop.xlane.xlu1 %1058  ;;  %v1101_v56 = vpop.xlane.xlu0 %1100 }
 0x197   : > { %v1888_v58 = vsel %vm1466_vm2, %v1887_v54, %v1883_v51  ;;  %v1275_v44 = vmul.f32 0.020408163, %v1059_v55  ;;  %v1289_v59 = vmul.f32 0.020408163, %v1101_v56 }
 0x199   : > { %v1892_v60 = vrot.slane %v1275_v44, %v2875_v34  ;;  %v1961_v16 = vrot.slane %v1289_v59, %v2878_v35 }
 0x19a   : > { %v1146_v62 = vpop.xlane.xlu1 %1145  ;;  %v1104_v63 = vpop.xlane.xlu0 %1103 }
 0x19b   : > { %v1893_v2 = vsel %vm1473_vm3, %v1892_v60, %v1888_v58  ;;  %v1962_v3 = vsel %vm1459_vm1, %v1961_v16, %v1957_v48  ;;  %v1290_v4 = vmul.f32 0.020408163, %v1104_v63  ;;  %v1304_v45 = vmul.f32 0.020408163, %v1146_v62 }
 0x19d   : > { %v1966_v5 = vrot.slane %v1290_v4, %v2881_v36  ;;  %v2036_v48 = vrot.slane %v1304_v45, %v2872_v32 }
 0x19e   : > { %v1062_v6 = vpop.xlane.xlu1 %1061  ;;  %v1149_v7 = vpop.xlane.xlu0 %1148 }
 0x19f   : > { %v1967_v8 = vsel %vm1466_vm2, %v1966_v5, %v1962_v3  ;;  %v1276_v40 = vmul.f32 0.020408163, %v1062_v6  ;;  %v1305_v41 = vmul.f32 0.020408163, %v1149_v7 }
 0x1a1   : > { %v1897_v54 = vrot.slane %v1276_v40, %v2891_v47  ;;  %v2040_v55 = vrot.slane %v1305_v41, %v2878_v35 }
 0x1a2   : > { %v1152_v9 = vpop.xlane.xlu1 %1151  ;;  %v1107_v10 = vpop.xlane.xlu0 %1106 }
 0x1a3   : > { %v1306_v49 = vmul.f32 0.020408163, %v1152_v9  ;;  %v1291_v51 = vmul.f32 0.020408163, %v1107_v10  ;;  %v1898_v6 = vsel %vm1480_vm4, %v1897_v54, %v1893_v2  ;;  %v2041_v35 = vsel %vm1459_vm1, %v2040_v55, %v2036_v48 }
 0x1a4   : > { %vm2120_vm1 = vcmask 1045509  }
 0x1a5   : > { %v2045_v60 = vrot.slane %v1306_v49, %v2881_v36  ;;  %v1971_v62 = vrot.slane %v1291_v51, %v2875_v34 }
 0x1a6   : > { %v1110_v17 = vpop.xlane.xlu1 %1109  ;;  %v1065_v12 = vpop.xlane.xlu0 %1064 }
 0x1a7   : > { %v1277_v56 = vmul.f32 0.020408163, %v1065_v12  ;;  %v1292_v58 = vmul.f32 0.020408163, %v1110_v17  ;;  %v2046_v12 = vsel %vm1466_vm2, %v2045_v60, %v2041_v35  ;;  %v1972_v2 = vsel %vm1473_vm3, %v1971_v62, %v1967_v8 }
 0x1a8   : > { %vm2122_vm2 = vcmask 1046534  }
 0x1a9   : > { %v1902_v7 = vrot.slane %v1277_v56, %v2888_v46  ;;  %v1976_v10 = vrot.slane %v1292_v58, %v2891_v47 }
 0x1aa   : > { %v1068_v14 = vpop.xlane.xlu1 %1067  ;;  %v1155_v15 = vpop.xlane.xlu0 %1154 }
 0x1ab   : > { %v1278_v44 = vmul.f32 0.020408163, %v1068_v14  ;;  %v1307_v59 = vmul.f32 0.020408163, %v1155_v15  ;;  %v1903_v45 = vsel %vm1487_vm5, %v1902_v7, %v1898_v6  ;;  %v1977_v51 = vsel %vm1480_vm4, %v1976_v10, %v1972_v2 }
 0x1ad   : > { %v1907_v32 = vrot.slane %v1278_v44, %v2909_v1  ;;  %v2050_v36 = vrot.slane %v1307_v59, %v2875_v34 }
 0x1ae   : > { %v1158_v19 = vpop.xlane.xlu1 %1157  ;;  %v1113_v21 = vpop.xlane.xlu0 %1112 }
 0x1af   : > { %v1308_v16 = vmul.f32 0.020408163, %v1158_v19  ;;  %v1293_v63 = vmul.f32 0.020408163, %v1113_v21 }
 0x1b1   : > { %v2055_v14 = vrot.slane %v1308_v16, %v2891_v47  ;;  %v1981_v15 = vrot.slane %v1293_v63, %v2888_v46  ;;  %v1908_v47 = vsel %vm1494_vm6, %v1907_v32, %v1903_v45 }
 0x1b2   : > { %v1116_v22 = vpop.xlane.xlu1 %1115  ;;  %v1071_v24 = vpop.xlane.xlu0 %1070 }
 0x1b3   : > { %v1294_v3 = vmul.f32 0.020408163, %v1116_v22  ;;  %v1279_v9 = vmul.f32 0.020408163, %v1071_v24 }
 0x1b5   : > { %v1986_v21 = vrot.slane %v1294_v3, %v2909_v1  ;;  %v1912_v34 = vrot.slane %v1279_v9, %v2906_v0 }
 0x1b6   : > { %v1074_v25 = vpop.xlane.xlu1 %1073  ;;  %v1161_v26 = vpop.xlane.xlu0 %1160 }
 0x1b7   : > { %v1280_v17 = vmul.f32 0.020408163, %v1074_v25  ;;  %v1309_v19 = vmul.f32 0.020408163, %v1161_v26  ;;  %v2051_v26 = vsel %vm1473_vm3, %v2050_v36, %v2046_v12  ;;  %v1913_v48 = vsel %vm1501_vm7, %v1912_v34, %v1908_v47  ;;  %vm3375_vm3 = vmmov %vm3374_vm0 }
 0x1b8   : > { %v2056_v54 = vsel %vm1480_vm4, %v2055_v14, %v2051_v26  ;;  %vm3376_vm4 = vmmov %vm3374_vm0 }
 0x1b9   : > { %v1917_v8 = vrot.slane %v1280_v17, %v2929_v23 }
 0x1ba   : > { %v1164_v27 = vpop.xlane.xlu1 %1163  ;;  %v1119_v20 = vpop.xlane.xlu0 %1118 }
 0x1bb   : > { %v1310_v22 = vmul.f32 0.020408163, %v1164_v27  ;;  %v1295_v24 = vmul.f32 0.020408163, %v1119_v20  ;;  %v1982_v27 = vsel %vm1487_vm5, %v1981_v15, %v1977_v51  ;;  %v2060_v20 = vrot.slane %v1309_v19, %v2888_v46 }
 0x1bc   : > { %v1987_v56 = vsel %vm1494_vm6, %v1986_v21, %v1982_v27  ;;  %v1918_v62 = vsel %vm1508_vm8, %v1917_v8, %v1913_v48 }
 0x1be   : > { %v1122_v28 = vpop.xlane.xlu1 %1121  ;;  %v1077_v29 = vpop.xlane.xlu0 %1076 }
 0x1bf   : > { %v1296_v25 = vmul.f32 0.020408163, %v1122_v28  ;;  %v1281_v49 = vmul.f32 0.020408163, %v1077_v29  ;;  %v2065_v28 = vrot.slane %v1310_v22, %v2909_v1  ;;  %v1991_v29 = vrot.slane %v1295_v24, %v2906_v0 }
 0x1c0   : > { %v2061_v1 = vsel %vm1487_vm5, %v2060_v20, %v2056_v54  ;;  %vm3377_vm5 = vmmov %vm3374_vm0 }
 0x1c1   : > { %v1996_v60 = vrot.slane %v1296_v25, %v2929_v23  ;;  %v1922_v16 = vrot.slane %v1281_v49, %v2923_v18  ;;  %v2066_v7 = vsel %vm1494_vm6, %v2065_v28, %v2061_v1  ;;  %v1992_v9 = vsel %vm1501_vm7, %v1991_v29, %v1987_v56 }
 0x1c2   : > { %v1080_v30 = vpop.xlane.xlu1 %1079  ;;  %v3216_v31 = vpop.xlane.xlu0 %1166  ;;  %vm2124_vm6 = vcmask 1047559  }
 0x1c3   : > { %v1282_v55 = vmul.f32 0.020408163, %v1080_v30  ;;  %v1311_v46 = vmul.f32 0.020408163, %v3216_v31 }
 0x1c6   : > { %v3218_v50 = vpop.xlane.xlu1 %1169  ;;  %v1125_v33 = vpop.xlane.xlu0 %1124 }
 0x1c7   : > { %v1297_v58 = vmul.f32 0.020408163, %v1125_v33  ;;  %v1927_v33 = vrot.slane %v1282_v55, %v2939_v39  ;;  %v1312_v6 = vmul.f32 0.020408163, %v3218_v50  ;;  %v2070_v50 = vrot.slane %v1311_v46, %v2906_v0 }
 0x1c9   : > { %v2075_v2 = vrot.slane %v1312_v6, %v2929_v23 }
 0x1ca   : > { %v3220_v37 = vpop.xlane.xlu1 %1127  ;;  %v1083_v38 = vpop.xlane.xlu0 %1082 }
 0x1cb   : > { %v1283_v63 = vmul.f32 0.020408163, %v1083_v38  ;;  %v1298_v30 = vmul.f32 0.020408163, %v3220_v37  ;;  %v2001_v38 = vrot.slane %v1297_v58, %v2923_v18  ;;  %v1997_v37 = vsel %vm1508_vm8, %v1996_v60, %v1992_v9 }
 0x1cd   : > { %v1932_v36 = vrot.slane %v1283_v63, %v2945_v43  ;;  %v2006_v12 = vrot.slane %v1298_v30, %v2939_v39  ;;  %v2002_v24 = vsel %vm1515_vm9, %v2001_v38, %v1997_v37 }
 0x1ce   : > { %v1086_v52 = vpop.xlane.xlu1 %1085  ;;  %v3222_v53 = vpop.xlane.xlu0 %1172 }
 0x1cf   : > { %v1284_v3 = vmul.f32 0.020408163, %v1086_v52  ;;  %v1923_v52 = vsel %vm1515_vm9, %v1922_v16, %v1918_v62  ;;  %v2007_v51 = vsel %vm1522_vm10, %v2006_v12, %v2002_v24  ;;  %v2071_v16 = vsel %vm1501_vm7, %v2070_v50, %v2066_v7 }
 0x1d0   : > { %v1928_v19 = vsel %vm1522_vm10, %v1927_v33, %v1923_v52  ;;  %v2076_v62 = vsel %vm1508_vm8, %v2075_v2, %v2071_v16 }
 0x1d1   : > { %v1937_v14 = vrot.slane %v1284_v3, %v2955_v57 }
 0x1d2   : > { %v3229_v4 = vpop.xlane.xlu1 %1175  ;;  %v1131_v5 = vpop.xlane.xlu0 %1130 }
 0x1d3   : > { %v1299_v17 = vmul.f32 0.020408163, %v1131_v5  ;;  %v1314_v5 = vmul.f32 0.020408163, %v3229_v4 }
 0x1d5   : > { %v2011_v25 = vrot.slane %v1299_v17, %v2945_v43  ;;  %v2085_v55 = vrot.slane %v1314_v5, %v2939_v39 }
 0x1d6   : > { %v1134_v40 = vpop.xlane.xlu1 %1133  ;;  %v1089_v41 = vpop.xlane.xlu0 %1088 }
 0x1d7   : > { %v1285_v35 = vmul.f32 0.020408163, %v1089_v41  ;;  %v1300_v15 = vmul.f32 0.020408163, %v1134_v40  ;;  %v1313_v41 = vmul.f32 0.020408163, %v3222_v53  ;;  %v1933_v40 = vsel %vm3375_vm3, %v1932_v36, %v1928_v19 }
 0x1d8   : > { %v1938_v47 = vsel %vm1536_vm12, %v1937_v14, %v1933_v40 }
 0x1d9   : > { %v1942_v21 = vrot.slane %v1285_v35, %v2961_v61  ;;  %v2016_v26 = vrot.slane %v1300_v15, %v2955_v57  ;;  %v2080_v20 = vrot.slane %v1313_v41, %v2923_v18 }
 0x1da   : > { %v1092_v44 = vpop.xlane.xlu1 %1091  ;;  %v1179_v59 = vpop.xlane.xlu0 %1178 }
 0x1db   : > { %v1286_v10 = vmul.f32 0.020408163, %v1092_v44  ;;  %v1315_v53 = vmul.f32 0.020408163, %v1179_v59  ;;  %v1943_v4 = vsel %vm1543_vm13, %v1942_v21, %v1938_v47  ;;  %v2012_v44 = vsel %vm3376_vm4, %v2011_v25, %v2007_v51 }
 0x1dc   : > { %v2017_v63 = vsel %vm1536_vm12, %v2016_v26, %v2012_v44  ;;  %v2081_v1 = vsel %vm1515_vm9, %v2080_v20, %v2076_v62 }
 0x1dd   : > { %v1947_v0 = vrot.slane %v1286_v10, %v2971_v11  ;;  %v2090_v18 = vrot.slane %v1315_v53, %v2945_v43  ;;  %v2086_v7 = vsel %vm1522_vm10, %v2085_v55, %v2081_v1 }
 0x1de   : > { %v1182_v32 = vpop.xlane.xlu1 %1181  ;;  %v1137_v31 = vpop.xlane.xlu0 %1136 }
 0x1df   : > { %v1301_v22 = vmul.f32 0.020408163, %v1137_v31  ;;  %v1316_v8 = vmul.f32 0.020408163, %v1182_v32  ;;  %v1948_v56 = vsel %vm1550_vm14, %v1947_v0, %v1943_v4 }
 0x1e1   : > { %v2021_v54 = vrot.slane %v1301_v22, %v2961_v61  ;;  %v2095_v46 = vrot.slane %v1316_v8, %v2955_v57  ;;  %v2091_v57 = vsel %vm3377_vm5, %v2090_v18, %v2086_v7 }
 0x1e2   : > { %v1140_v45 = vpop.xlane.xlu1 %1139  ;;  %v1095_v34 = vpop.xlane.xlu0 %1094 }
 0x1e3   : > { %v1302_v49 = vmul.f32 0.020408163, %v1140_v45  ;;  %v1287_v23 = vmul.f32 0.020408163, %v1095_v34  ;;  %v2022_v30 = vsel %vm1543_vm13, %v2021_v54, %v2017_v63  ;;  %v2096_v32 = vsel %vm1536_vm12, %v2095_v46, %v2091_v57 }
 0x1e5   : > { %v1952_v27 = vrot.slane %v1287_v23, %v2976_v13  ;;  %v2026_v28 = vrot.slane %v1302_v49, %v2971_v11 }
 0x1e6   : > { %v1143_v29 = vpop.xlane.xlu1 %1142  ;;  %v1185_v58 = vpop.xlane.xlu0 %1184 }
 0x1e7   : > { %v1953_v59 = vsel %vm1557_vm15, %v1952_v27, %v1948_v56  ;;  %v1303_v48 = vmul.f32 0.020408163, %v1143_v29  ;;  %v1317_v60 = vmul.f32 0.020408163, %v1185_v58  ;;  %v2027_v33 = vsel %vm1550_vm14, %v2026_v28, %v2022_v30 }
 0x1e8   : > { %v2121_v39 = vsel %vm2120_vm1, %v1953_v59, %v3204_v42 }
 0x1e9   : > { %v2031_v3 = vrot.slane %v1303_v48, %v2976_v13  ;;  %v2100_v6 = vrot.slane %v1317_v60, %v2961_v61 }
 0x1ea   : > { %v1188_v35 = vpop.xlane.xlu0 %1187  ;;  %v1191_v43 = vpop.xlane.xlu1 %1190 }
 0x1eb   : > { %v2032_v42 = vsel %vm1557_vm15, %v2031_v3, %v2027_v33  ;;  %v1318_v9 = vmul.f32 0.020408163, %v1188_v35  ;;  %v1319_v38 = vmul.f32 0.020408163, %v1191_v43  ;;  %v2101_v37 = vsel %vm1543_vm13, %v2100_v6, %v2096_v32 }
 0x1ec   : > { %v2123_v10 = vsel %vm2122_vm2, %v2032_v42, %v2121_v39 }
 0x1ed   : > { %v2105_v31 = vrot.slane %v1318_v9, %v2971_v11  ;;  %v2110_v61 = vrot.slane %v1319_v38, %v2976_v13 }
 0x1ef   : > { %v2106_v52 = vsel %vm1550_vm14, %v2105_v31, %v2101_v37 }
 0x1f0   : > { %v2111_v36 = vsel %vm1557_vm15, %v2110_v61, %v2106_v52 }
 0x1f1   : > { %v2125_v11 = vsel %vm2124_vm6, %v2111_v36, %v2123_v10 }
 0x1f2   : > { %2127 = vst [vmem:[%s676_s3] sm:$0xff] %v2125_v11 }
 0x1f3   : > { %2305 = shalt.err (!%p2302_p7)
}
 0x1f4   : > { %s2306_s22 = scalar_lea.hbm %s3320_s13, 128  ;;  %s2310_s25 = scalar_lea.hbm %s3369_s1, 384 }
 0x1f5   : > { %p2307_p8 = scmp.ne.s32.totalorder %s3320_s13, %s2306_s22  ;;  %p2311_p12 = scmp.lt.u32.totalorder %s3320_s13, %s3369_s1 }
 0x1f6   : > { %p2312_p13 = scmp.lt.u32.totalorder %s2310_s25, %s2306_s22  ;;  %p2314_p1 = scmp.lt.u32.totalorder %s2306_s22, %s3320_s13 }
 0x1f7   : > { %p2308_p10 = pnand %p2307_p8, %p2422_p5 }
 0x1f8   : > { %p2313_p0 = por %p2312_p13, %p2311_p12 }
 0x1f9   : > { %p2309_p11 = pneg %p2308_p10 }
 0x1fa   : > { %p2315_p2 = por %p2314_p1, %p2313_p0 }
 0x1fc   : > { %p2316_p3 = pnand %p2315_p2, %p2309_p11 }
 0x1fe   : > { %2319 = shalt.err (!%p2316_p3)
}
 0x1ff   : > { %2237 = dma.vmem_to_hbm [thread:$0]  (%p2422_p5), %s3322_s4, 128, %s3320_s13, %s2129_s9  }
 0x200 PF: > { %p2243_p4 = scmp.ge.s32.totalorder %s2370_s11, 2  ;;  %s2156_s28 = sand.u32 1, %s2350_s6  }
 0x201   : > { %s2157_s29 = scalar_lea.sflag [#allocation4], %s2156_s28 }
 0x202   : > { %p2240_p6 = pnand %p2243_p4, %p2433_p9 }
 0x204   : > { %2345 = dma.done.wait (!%p2240_p6), %s2157_s29, 128  }
 0x205   : > { %2347 = vsyncadd (!%p2240_p6), %s2157_s29, 4294967168  ;;  %s14_s11 = sadd.s32 1, %s2370_s11   ;;  %s3378_s6 = smov %s2354_s7 }
 0x206   : > { %p11_p7 = scmp.ge.s32.totalorder %s14_s11, 5   ;;  %s3379_s7 = smov %s2358_s8 }
 0x207   : > { %s3380_s8 = smov %s2431_s18  ;;  %s3381_s9 = smov %s2366_s10 }
 0x208   : > { %s3382_s10 = smov %s3384_s14  ;;  %13 = sbr.rel (!%p11_p7) target bundleno = 4 (0x4), region = 102 }
 0x20f   :  { %2162 = vsyncpa [#allocation4], 1 }
 0x210   :  { %2164 = vsyncpa [#allocation4 + $0x1], 1 }

</bundles_post_ra>
